<compile_context>
chip_gen: v7x
topology: tpu7x:2x2x1
jax: 0.10.0
libtpu: 0.0.40
codegen_flags: <defaults>
</compile_context>

<pallas_src>
import functools
import math

import jax
import jax.numpy as jnp
from jax.experimental import pallas as pl
from jax.experimental.pallas import tpu as pltpu


def _layernorm(x, gamma, beta, eps=1e-5):
    m = jnp.mean(x, axis=-1, keepdims=True)
    v = jnp.mean((x - m) ** 2, axis=-1, keepdims=True)
    return (x - m) * jax.lax.rsqrt(v + eps) * gamma + beta


def _block_kernel(mu_ref, var_ref,
                  wqkv_ref, bqkv_ref, wv_sq_ref,
                  wo_ref, bo_ref, wo_sq_ref,
                  w1_ref, b1_ref, w1_sq_ref,
                  w2_ref, b2_ref, w2_sq_ref,
                  g1_ref, be1_ref, g2_ref, be2_ref,
                  omu_ref, ovar_ref,
                  *, num_heads):
    f32 = jnp.float32
    mu = mu_ref[...]          # (S, D) — batch dim squeezed by the BlockSpec
    var = var_ref[...]        # (S, D)
    S, D = mu.shape
    hd = D // num_heads
    scale = 1.0 / math.sqrt(hd)

    # ---- DistAttention ----------------------------------------------------
    # Fused Q|K|V(mu) projection: one (S, D) @ (D, 3D) MXU call.
    qkv = jnp.dot(mu, wqkv_ref[...], preferred_element_type=f32) + bqkv_ref[...]
    q = qkv[:, :D]
    k = qkv[:, D:2 * D]
    v_mu = qkv[:, 2 * D:]
    # Variance path: var @ W^2 (squared weights precomputed once in wrapper).
    v_var = jnp.dot(var, wv_sq_ref[...], preferred_element_type=f32)

    def to_heads(x):          # (S, D) -> (H, S, hd); heads become a batch dim
        return x.reshape(S, num_heads, hd).transpose(1, 0, 2)

    qh, kh = to_heads(q), to_heads(k)
    vmh, vvh = to_heads(v_mu), to_heads(v_var)

    # All heads in one batched contraction: no per-head python loop, no concat.
    s = jnp.einsum("hqd,hkd->hqk", qh, kh, preferred_element_type=f32) * scale
    s = s - jnp.max(s, axis=-1, keepdims=True)
    p = jnp.exp(s)
    p = p * pl.reciprocal(jnp.sum(p, axis=-1, keepdims=True), approx=True)
    o_mu_h = jnp.einsum("hqk,hkd->hqd", p, vmh, preferred_element_type=f32)
    o_var_h = jnp.einsum("hqk,hkd->hqd", p * p, vvh, preferred_element_type=f32)

    attn_cat_mu = o_mu_h.transpose(1, 0, 2).reshape(S, D)
    attn_cat_var = o_var_h.transpose(1, 0, 2).reshape(S, D)

    attn_mu = jnp.dot(attn_cat_mu, wo_ref[...], preferred_element_type=f32) + bo_ref[...]
    attn_var = jnp.dot(attn_cat_var, wo_sq_ref[...], preferred_element_type=f32)

    g1, be1 = g1_ref[...], be1_ref[...]
    g2, be2 = g2_ref[...], be2_ref[...]

    # ---- residual 1 + norm1 -------------------------------------------------
    res1_mu = mu + attn_mu
    res1_var = var + attn_var
    d1_mu = _layernorm(res1_mu, g1, be1)
    d1_var = _layernorm(res1_var, g1, be1)

    # ---- DistFeedForward ----------------------------------------------------
    h_mu = jnp.dot(d1_mu, w1_ref[...], preferred_element_type=f32) + b1_ref[...]
    h_var = jnp.dot(d1_var, w1_sq_ref[...], preferred_element_type=f32)
    gate = h_mu > 0
    r_mu = jnp.where(gate, h_mu, 0.0)
    r_var = jnp.where(gate, h_var, 0.0)
    ffn_mu = jnp.dot(r_mu, w2_ref[...], preferred_element_type=f32) + b2_ref[...]
    ffn_var = jnp.dot(r_var, w2_sq_ref[...], preferred_element_type=f32)

    # ---- residual 2 + norm2 -------------------------------------------------
    res2_mu = d1_mu + ffn_mu
    res2_var = d1_var + ffn_var
    omu_ref[...] = _layernorm(res2_mu, g2, be2)
    ovar_ref[...] = _layernorm(res2_var, g2, be2)


def dist_transformer_block(mu, var, params, num_heads):
    """mu, var: [B, S, D] f32.  params: dict of pre-transposed (d_in, d_out) weights."""
    B, S, D = mu.shape
    d_ff = params["w1"].shape[1]

    # Hoisted once in the wrapper (computed on-device by XLA, reused for all B
    # grid steps inside the kernel): fused QKV weight/bias and squared weights.
    wqkv = jnp.concatenate([params["wq"], params["wk"], params["wv"]], axis=1)
    bqkv = jnp.concatenate([params["bq"], params["bk"], params["bv"]], axis=1)
    wv_sq = params["wv"] * params["wv"]
    wo_sq = params["wo"] * params["wo"]
    w1_sq = params["w1"] * params["w1"]
    w2_sq = params["w2"] * params["w2"]

    weight_args = [wqkv, bqkv, wv_sq,
                   params["wo"], params["bo"], wo_sq,
                   params["w1"], params["b1"], w1_sq,
                   params["w2"], params["b2"], w2_sq,
                   params["g1"], params["be1"], params["g2"], params["be2"]]

    # (None, S, D): squeeze the batch dim so the kernel sees plain (S, D) tiles.
    io_spec = pl.BlockSpec((None, S, D), lambda b: (b, 0, 0))

    def full(shape):
        return pl.BlockSpec(shape, lambda b: (0,) * len(shape))

    weight_specs = [full(a.shape) for a in weight_args]

    # VMEM budget: double-buffered IO tiles + double-buffered resident weights
    # + elementwise temporaries, clamped so it is valid on every generation
    # (v7x VMEM is 64 MiB).  For the demo shapes this lands at the 32 MiB floor.
    f32b = 4
    io_bytes = 2 * 2 * 2 * S * D * f32b
    w_bytes = 2 * sum(int(a.size) for a in weight_args) * f32b
    tmp_bytes = (3 * num_heads * S * S + 4 * S * d_ff + 16 * S * D) * f32b
    vmem_limit = max(32 << 20,
                     min(64 << 20, int(1.5 * (io_bytes + w_bytes + tmp_bytes))))

    kernel = functools.partial(_block_kernel, num_heads=num_heads)

    out_mu, out_var = pl.pallas_call(
        kernel,
        out_shape=(jax.ShapeDtypeStruct((B, S, D), jnp.float32),
                   jax.ShapeDtypeStruct((B, S, D), jnp.float32)),
        grid_spec=pltpu.PrefetchScalarGridSpec(
            num_scalar_prefetch=0,
            grid=(B,),
            in_specs=[io_spec, io_spec] + weight_specs,
            out_specs=[io_spec, io_spec],
        ),
        compiler_params=pltpu.CompilerParams(
            # batches are independent -> shard across TensorCores on v7x
            dimension_semantics=("parallel",),
            vmem_limit_bytes=vmem_limit),
    )(mu, var, *weight_args)
    return out_mu, out_var


# ---------------- pure-JAX reference (same math, exact softmax) -------------
def _reference(mu, var, p, num_heads):
    B, S, D = mu.shape
    hd = D // num_heads

    def ln(x, g, b):
        m = x.mean(-1, keepdims=True)
        v = ((x - m) ** 2).mean(-1, keepdims=True)
        return (x - m) / jnp.sqrt(v + 1e-5) * g + b

    q = mu @ p["wq"] + p["bq"]
    k = mu @ p["wk"] + p["bk"]
    vmu = mu @ p["wv"] + p["bv"]
    vvar = var @ (p["wv"] ** 2)

    def heads(x):
        return x.reshape(B, S, num_heads, hd).transpose(0, 2, 1, 3)

    qh, kh, vmh, vvh = heads(q), heads(k), heads(vmu), heads(vvar)
    s = jnp.einsum("bhqd,bhkd->bhqk", qh, kh) / math.sqrt(hd)
    pattn = jax.nn.softmax(s, axis=-1)
    omu = jnp.einsum("bhqk,bhkd->bhqd", pattn, vmh)
    ovar = jnp.einsum("bhqk,bhkd->bhqd", pattn ** 2, vvh)
    omu = omu.transpose(0, 2, 1, 3).reshape(B, S, D)
    ovar = ovar.transpose(0, 2, 1, 3).reshape(B, S, D)
    amu = omu @ p["wo"] + p["bo"]
    avar = ovar @ (p["wo"] ** 2)

    r1m, r1v = mu + amu, var + avar
    d1m, d1v = ln(r1m, p["g1"], p["be1"]), ln(r1v, p["g1"], p["be1"])

    hm = d1m @ p["w1"] + p["b1"]
    hv = d1v @ (p["w1"] ** 2)
    gate = (hm > 0).astype(jnp.float32)
    fm = (hm * gate) @ p["w2"] + p["b2"]
    fv = (hv * gate) @ (p["w2"] ** 2)

    r2m, r2v = d1m + fm, d1v + fv
    return ln(r2m, p["g2"], p["be2"]), ln(r2v, p["g2"], p["be2"])


if __name__ == "__main__":
    # Small demo shapes (real deployments should use D, hd multiples of 128 for
    # lane-dense stores — see review; demo keeps the module's "small" config).
    B, S, D, H, D_FF = 2, 8, 32, 4, 64

    key = jax.random.PRNGKey(0)
    keys = jax.random.split(key, 16)

    def w(k, shape, scale):
        return jax.random.normal(k, shape, jnp.float32) * scale

    params = {
        # weights stored pre-transposed as (d_in, d_out) so kernel does x @ W
        "wq": w(keys[0], (D, D), 1.0 / math.sqrt(D)),
        "bq": w(keys[1], (1, D), 0.02),
        "wk": w(keys[2], (D, D), 1.0 / math.sqrt(D)),
        "bk": w(keys[3], (1, D), 0.02),
        "wv": w(keys[4], (D, D), 1.0 / math.sqrt(D)),
        "bv": w(keys[5], (1, D), 0.02),
        "wo": w(keys[6], (D, D), 1.0 / math.sqrt(D)),
        "bo": w(keys[7], (1, D), 0.02),
        "w1": w(keys[8], (D, D_FF), 1.0 / math.sqrt(D)),
        "b1": w(keys[9], (1, D_FF), 0.02),
        "w2": w(keys[10], (D_FF, D), 1.0 / math.sqrt(D_FF)),
        "b2": w(keys[11], (1, D), 0.02),
        "g1": jnp.ones((1, D), jnp.float32),
        "be1": jnp.zeros((1, D), jnp.float32),
        "g2": jnp.ones((1, D), jnp.float32),
        "be2": jnp.zeros((1, D), jnp.float32),
    }

    mu = jax.random.normal(keys[12], (B, S, D), jnp.float32)
    var = jax.nn.softplus(jax.random.normal(keys[13], (B, S, D), jnp.float32))

    out_mu, out_var = dist_transformer_block(mu, var, params, num_heads=H)
    jax.block_until_ready((out_mu, out_var))

    ref_mu, ref_var = _reference(mu, var, params, H)
    # Tolerance is looser than f32-exact (1e-4) because the softmax denominator
    # uses the approximate EUP reciprocal (pl.reciprocal(approx=True)).
    assert jnp.allclose(out_mu, ref_mu, atol=1e-2, rtol=1e-2), "mu mismatch"
    assert jnp.allclose(out_var, ref_var, atol=1e-2, rtol=1e-2), "var mismatch"

    print("KERNEL_OK")
</pallas_src>

<mosaic_0001>
module attributes {stable_mosaic.version = 11 : i64} {
  func.func @_block_kernel(%arg0: i32, %arg1: memref<1x8x32xf32, #tpu.memory_space<vmem>>, %arg2: memref<1x8x32xf32, #tpu.memory_space<vmem>>, %arg3: memref<32x96xf32, #tpu.memory_space<vmem>>, %arg4: memref<1x96xf32, #tpu.memory_space<vmem>>, %arg5: memref<32x32xf32, #tpu.memory_space<vmem>>, %arg6: memref<32x32xf32, #tpu.memory_space<vmem>>, %arg7: memref<1x32xf32, #tpu.memory_space<vmem>>, %arg8: memref<32x32xf32, #tpu.memory_space<vmem>>, %arg9: memref<32x64xf32, #tpu.memory_space<vmem>>, %arg10: memref<1x64xf32, #tpu.memory_space<vmem>>, %arg11: memref<32x64xf32, #tpu.memory_space<vmem>>, %arg12: memref<64x32xf32, #tpu.memory_space<vmem>>, %arg13: memref<1x32xf32, #tpu.memory_space<vmem>>, %arg14: memref<64x32xf32, #tpu.memory_space<vmem>>, %arg15: memref<1x32xf32, #tpu.memory_space<vmem>>, %arg16: memref<1x32xf32, #tpu.memory_space<vmem>>, %arg17: memref<1x32xf32, #tpu.memory_space<vmem>>, %arg18: memref<1x32xf32, #tpu.memory_space<vmem>>, %arg19: memref<1x8x32xf32, #tpu.memory_space<vmem>>, %arg20: memref<1x8x32xf32, #tpu.memory_space<vmem>>) attributes {dimension_semantics = [#tpu.dimension_semantics<parallel>], iteration_bounds = array<i64: 2>, scalar_prefetch = 0 : i64, scratch_operands = 0 : i64, tpu.core_type = #tpu.core_type<tc>, window_params = [{transform_indices = @transform_0, window_bounds = array<i64: 1, 8, 32>}, {transform_indices = @transform_1, window_bounds = array<i64: 1, 8, 32>}, {pipeline_mode = #tpu.pipeline_mode<synchronous>, transform_indices = @transform_2, window_bounds = array<i64: 32, 96>}, {pipeline_mode = #tpu.pipeline_mode<synchronous>, transform_indices = @transform_3, window_bounds = array<i64: 1, 96>}, {pipeline_mode = #tpu.pipeline_mode<synchronous>, transform_indices = @transform_4, window_bounds = array<i64: 32, 32>}, {pipeline_mode = #tpu.pipeline_mode<synchronous>, transform_indices = @transform_5, window_bounds = array<i64: 32, 32>}, {pipeline_mode = #tpu.pipeline_mode<synchronous>, transform_indices = @transform_6, window_bounds = array<i64: 1, 32>}, {pipeline_mode = #tpu.pipeline_mode<synchronous>, transform_indices = @transform_7, window_bounds = array<i64: 32, 32>}, {pipeline_mode = #tpu.pipeline_mode<synchronous>, transform_indices = @transform_8, window_bounds = array<i64: 32, 64>}, {pipeline_mode = #tpu.pipeline_mode<synchronous>, transform_indices = @transform_9, window_bounds = array<i64: 1, 64>}, {pipeline_mode = #tpu.pipeline_mode<synchronous>, transform_indices = @transform_10, window_bounds = array<i64: 32, 64>}, {pipeline_mode = #tpu.pipeline_mode<synchronous>, transform_indices = @transform_11, window_bounds = array<i64: 64, 32>}, {pipeline_mode = #tpu.pipeline_mode<synchronous>, transform_indices = @transform_12, window_bounds = array<i64: 1, 32>}, {pipeline_mode = #tpu.pipeline_mode<synchronous>, transform_indices = @transform_13, window_bounds = array<i64: 64, 32>}, {pipeline_mode = #tpu.pipeline_mode<synchronous>, transform_indices = @transform_14, window_bounds = array<i64: 1, 32>}, {pipeline_mode = #tpu.pipeline_mode<synchronous>, transform_indices = @transform_15, window_bounds = array<i64: 1, 32>}, {pipeline_mode = #tpu.pipeline_mode<synchronous>, transform_indices = @transform_16, window_bounds = array<i64: 1, 32>}, {pipeline_mode = #tpu.pipeline_mode<synchronous>, transform_indices = @transform_17, window_bounds = array<i64: 1, 32>}, {transform_indices = @transform_18, window_bounds = array<i64: 1, 8, 32>}, {transform_indices = @transform_19, window_bounds = array<i64: 1, 8, 32>}]} {
    %c0 = arith.constant 0 : index
    %c0_0 = arith.constant 0 : index
    %c0_1 = arith.constant 0 : index
    %0 = vector.load %arg1[%c0, %c0_0, %c0_1] : memref<1x8x32xf32, #tpu.memory_space<vmem>>, vector<1x8x32xf32>
    %1 = vector.shape_cast %0 : vector<1x8x32xf32> to vector<8x32xf32>
    %c0_2 = arith.constant 0 : index
    %c0_3 = arith.constant 0 : index
    %c0_4 = arith.constant 0 : index
    %2 = vector.load %arg2[%c0_2, %c0_3, %c0_4] : memref<1x8x32xf32, #tpu.memory_space<vmem>>, vector<1x8x32xf32>
    %3 = vector.shape_cast %2 : vector<1x8x32xf32> to vector<8x32xf32>
    %c0_5 = arith.constant 0 : index
    %c0_6 = arith.constant 0 : index
    %4 = vector.load %arg3[%c0_5, %c0_6] : memref<32x96xf32, #tpu.memory_space<vmem>>, vector<32x96xf32>
    %cst = arith.constant dense<0.000000e+00> : vector<8x96xf32>
    %5 = tpu.matmul %1, %4, %cst {dimension_numbers = #tpu.dot_dimension_numbers<[1], [0], [0], [1], [0, 0, 1, 1], [], []>} : vector<8x32xf32>, vector<32x96xf32>, vector<8x96xf32> -> vector<8x96xf32>
    %c0_7 = arith.constant 0 : index
    %c0_8 = arith.constant 0 : index
    %6 = vector.load %arg4[%c0_7, %c0_8] : memref<1x96xf32, #tpu.memory_space<vmem>>, vector<1x96xf32>
    %7 = vector.broadcast %6 : vector<1x96xf32> to vector<8x96xf32>
    %8 = arith.addf %5, %7 : vector<8x96xf32>
    %9 = vector.extract_strided_slice %8 {offsets = [0, 0], sizes = [8, 32], strides = [1, 1]} : vector<8x96xf32> to vector<8x32xf32>
    %10 = vector.extract_strided_slice %8 {offsets = [0, 32], sizes = [8, 32], strides = [1, 1]} : vector<8x96xf32> to vector<8x32xf32>
    %11 = vector.extract_strided_slice %8 {offsets = [0, 64], sizes = [8, 32], strides = [1, 1]} : vector<8x96xf32> to vector<8x32xf32>
    %c0_9 = arith.constant 0 : index
    %c0_10 = arith.constant 0 : index
    %12 = vector.load %arg5[%c0_9, %c0_10] : memref<32x32xf32, #tpu.memory_space<vmem>>, vector<32x32xf32>
    %cst_11 = arith.constant dense<0.000000e+00> : vector<8x32xf32>
    %13 = tpu.matmul %3, %12, %cst_11 {dimension_numbers = #tpu.dot_dimension_numbers<[1], [0], [0], [1], [0, 0, 1, 1], [], []>} : vector<8x32xf32>, vector<32x32xf32>, vector<8x32xf32> -> vector<8x32xf32>
    %14 = vector.shape_cast %9 : vector<8x32xf32> to vector<8x4x8xf32>
    %15 = tpu.transpose %14, [1, 0, 2] : vector<8x4x8xf32> -> vector<4x8x8xf32>
    %16 = vector.shape_cast %10 : vector<8x32xf32> to vector<8x4x8xf32>
    %17 = tpu.transpose %16, [1, 0, 2] : vector<8x4x8xf32> -> vector<4x8x8xf32>
    %18 = vector.shape_cast %11 : vector<8x32xf32> to vector<8x4x8xf32>
    %19 = tpu.transpose %18, [1, 0, 2] : vector<8x4x8xf32> -> vector<4x8x8xf32>
    %20 = vector.shape_cast %13 : vector<8x32xf32> to vector<8x4x8xf32>
    %21 = tpu.transpose %20, [1, 0, 2] : vector<8x4x8xf32> -> vector<4x8x8xf32>
    "tpu.trace_start"() <{level = 10 : i32, message = "hqd,hkd->hqk"}> : () -> ()
    %cst_12 = arith.constant dense<0.000000e+00> : vector<4x8x8xf32>
    %22 = tpu.matmul %15, %17, %cst_12 {dimension_numbers = #tpu.dot_dimension_numbers<[2], [2], [1], [1], [0, 0, 0, 1, 1, 1], [0], [0]>} : vector<4x8x8xf32>, vector<4x8x8xf32>, vector<4x8x8xf32> -> vector<4x8x8xf32>
    "tpu.trace_stop"() : () -> ()
    %cst_13 = arith.constant 0.353553385 : f32
    %23 = vector.broadcast %cst_13 : f32 to vector<4x8x8xf32>
    %24 = arith.mulf %22, %23 : vector<4x8x8xf32>
    %cst_14 = arith.constant dense<0xFF800000> : vector<4x8xf32>
    %25 = vector.multi_reduction <maximumf>, %24, %cst_14 [2] : vector<4x8x8xf32> to vector<4x8xf32>
    %26 = vector.shape_cast %25 : vector<4x8xf32> to vector<4x8x1xf32>
    %27 = vector.broadcast %26 : vector<4x8x1xf32> to vector<4x8x8xf32>
    %28 = arith.subf %24, %27 : vector<4x8x8xf32>
    %29 = math.exp %28 : vector<4x8x8xf32>
    %cst_15 = arith.constant dense<0.000000e+00> : vector<4x8xf32>
    %30 = vector.multi_reduction <add>, %29, %cst_15 [2] : vector<4x8x8xf32> to vector<4x8xf32>
    %31 = vector.shape_cast %30 : vector<4x8xf32> to vector<4x8x1xf32>
    %32 = tpu.reciprocal %31 {approx = true} : vector<4x8x1xf32> -> vector<4x8x1xf32>
    %33 = vector.broadcast %32 : vector<4x8x1xf32> to vector<4x8x8xf32>
    %34 = arith.mulf %29, %33 : vector<4x8x8xf32>
    "tpu.trace_start"() <{level = 10 : i32, message = "hqk,hkd->hqd"}> : () -> ()
    %cst_16 = arith.constant dense<0.000000e+00> : vector<4x8x8xf32>
    %35 = tpu.matmul %34, %19, %cst_16 {dimension_numbers = #tpu.dot_dimension_numbers<[2], [1], [1], [2], [0, 0, 0, 1, 1, 2], [0], [0]>} : vector<4x8x8xf32>, vector<4x8x8xf32>, vector<4x8x8xf32> -> vector<4x8x8xf32>
    "tpu.trace_stop"() : () -> ()
    %36 = arith.mulf %34, %34 : vector<4x8x8xf32>
    "tpu.trace_start"() <{level = 10 : i32, message = "hqk,hkd->hqd"}> : () -> ()
    %cst_17 = arith.constant dense<0.000000e+00> : vector<4x8x8xf32>
    %37 = tpu.matmul %36, %21, %cst_17 {dimension_numbers = #tpu.dot_dimension_numbers<[2], [1], [1], [2], [0, 0, 0, 1, 1, 2], [0], [0]>} : vector<4x8x8xf32>, vector<4x8x8xf32>, vector<4x8x8xf32> -> vector<4x8x8xf32>
    "tpu.trace_stop"() : () -> ()
    %38 = tpu.transpose %35, [1, 0, 2] : vector<4x8x8xf32> -> vector<8x4x8xf32>
    %39 = vector.shape_cast %38 : vector<8x4x8xf32> to vector<8x32xf32>
    %40 = tpu.transpose %37, [1, 0, 2] : vector<4x8x8xf32> -> vector<8x4x8xf32>
    %41 = vector.shape_cast %40 : vector<8x4x8xf32> to vector<8x32xf32>
    %c0_18 = arith.constant 0 : index
    %c0_19 = arith.constant 0 : index
    %42 = vector.load %arg6[%c0_18, %c0_19] : memref<32x32xf32, #tpu.memory_space<vmem>>, vector<32x32xf32>
    %cst_20 = arith.constant dense<0.000000e+00> : vector<8x32xf32>
    %43 = tpu.matmul %39, %42, %cst_20 {dimension_numbers = #tpu.dot_dimension_numbers<[1], [0], [0], [1], [0, 0, 1, 1], [], []>} : vector<8x32xf32>, vector<32x32xf32>, vector<8x32xf32> -> vector<8x32xf32>
    %c0_21 = arith.constant 0 : index
    %c0_22 = arith.constant 0 : index
    %44 = vector.load %arg7[%c0_21, %c0_22] : memref<1x32xf32, #tpu.memory_space<vmem>>, vector<1x32xf32>
    %45 = vector.broadcast %44 : vector<1x32xf32> to vector<8x32xf32>
    %46 = arith.addf %43, %45 : vector<8x32xf32>
    %c0_23 = arith.constant 0 : index
    %c0_24 = arith.constant 0 : index
    %47 = vector.load %arg8[%c0_23, %c0_24] : memref<32x32xf32, #tpu.memory_space<vmem>>, vector<32x32xf32>
    %cst_25 = arith.constant dense<0.000000e+00> : vector<8x32xf32>
    %48 = tpu.matmul %41, %47, %cst_25 {dimension_numbers = #tpu.dot_dimension_numbers<[1], [0], [0], [1], [0, 0, 1, 1], [], []>} : vector<8x32xf32>, vector<32x32xf32>, vector<8x32xf32> -> vector<8x32xf32>
    %c0_26 = arith.constant 0 : index
    %c0_27 = arith.constant 0 : index
    %49 = vector.load %arg15[%c0_26, %c0_27] : memref<1x32xf32, #tpu.memory_space<vmem>>, vector<1x32xf32>
    %c0_28 = arith.constant 0 : index
    %c0_29 = arith.constant 0 : index
    %50 = vector.load %arg16[%c0_28, %c0_29] : memref<1x32xf32, #tpu.memory_space<vmem>>, vector<1x32xf32>
    %c0_30 = arith.constant 0 : index
    %c0_31 = arith.constant 0 : index
    %51 = vector.load %arg17[%c0_30, %c0_31] : memref<1x32xf32, #tpu.memory_space<vmem>>, vector<1x32xf32>
    %c0_32 = arith.constant 0 : index
    %c0_33 = arith.constant 0 : index
    %52 = vector.load %arg18[%c0_32, %c0_33] : memref<1x32xf32, #tpu.memory_space<vmem>>, vector<1x32xf32>
    %53 = arith.addf %1, %46 : vector<8x32xf32>
    %54 = arith.addf %3, %48 : vector<8x32xf32>
    %cst_34 = arith.constant dense<0.000000e+00> : vector<8xf32>
    %55 = vector.multi_reduction <add>, %53, %cst_34 [1] : vector<8x32xf32> to vector<8xf32>
    %56 = vector.shape_cast %55 : vector<8xf32> to vector<8x1xf32>
    %cst_35 = arith.constant 3.200000e+01 : f32
    %57 = vector.broadcast %cst_35 : f32 to vector<8x1xf32>
    %58 = arith.divf %56, %57 : vector<8x1xf32>
    %59 = vector.broadcast %58 : vector<8x1xf32> to vector<8x32xf32>
    %60 = arith.subf %53, %59 : vector<8x32xf32>
    %61 = arith.mulf %60, %60 : vector<8x32xf32>
    %cst_36 = arith.constant dense<0.000000e+00> : vector<8xf32>
    %62 = vector.multi_reduction <add>, %61, %cst_36 [1] : vector<8x32xf32> to vector<8xf32>
    %63 = vector.shape_cast %62 : vector<8xf32> to vector<8x1xf32>
    %cst_37 = arith.constant 3.200000e+01 : f32
    %64 = vector.broadcast %cst_37 : f32 to vector<8x1xf32>
    %65 = arith.divf %63, %64 : vector<8x1xf32>
    %66 = vector.broadcast %58 : vector<8x1xf32> to vector<8x32xf32>
    %67 = arith.subf %53, %66 : vector<8x32xf32>
    %cst_38 = arith.constant 9.99999974E-6 : f32
    %68 = vector.broadcast %cst_38 : f32 to vector<8x1xf32>
    %69 = arith.addf %65, %68 : vector<8x1xf32>
    %70 = math.rsqrt %69 : vector<8x1xf32>
    %71 = vector.broadcast %70 : vector<8x1xf32> to vector<8x32xf32>
    %72 = arith.mulf %67, %71 : vector<8x32xf32>
    %73 = vector.broadcast %49 : vector<1x32xf32> to vector<8x32xf32>
    %74 = arith.mulf %72, %73 : vector<8x32xf32>
    %75 = vector.broadcast %50 : vector<1x32xf32> to vector<8x32xf32>
    %76 = arith.addf %74, %75 : vector<8x32xf32>
    %cst_39 = arith.constant dense<0.000000e+00> : vector<8xf32>
    %77 = vector.multi_reduction <add>, %54, %cst_39 [1] : vector<8x32xf32> to vector<8xf32>
    %78 = vector.shape_cast %77 : vector<8xf32> to vector<8x1xf32>
    %cst_40 = arith.constant 3.200000e+01 : f32
    %79 = vector.broadcast %cst_40 : f32 to vector<8x1xf32>
    %80 = arith.divf %78, %79 : vector<8x1xf32>
    %81 = vector.broadcast %80 : vector<8x1xf32> to vector<8x32xf32>
    %82 = arith.subf %54, %81 : vector<8x32xf32>
    %83 = arith.mulf %82, %82 : vector<8x32xf32>
    %cst_41 = arith.constant dense<0.000000e+00> : vector<8xf32>
    %84 = vector.multi_reduction <add>, %83, %cst_41 [1] : vector<8x32xf32> to vector<8xf32>
    %85 = vector.shape_cast %84 : vector<8xf32> to vector<8x1xf32>
    %cst_42 = arith.constant 3.200000e+01 : f32
    %86 = vector.broadcast %cst_42 : f32 to vector<8x1xf32>
    %87 = arith.divf %85, %86 : vector<8x1xf32>
    %88 = vector.broadcast %80 : vector<8x1xf32> to vector<8x32xf32>
    %89 = arith.subf %54, %88 : vector<8x32xf32>
    %cst_43 = arith.constant 9.99999974E-6 : f32
    %90 = vector.broadcast %cst_43 : f32 to vector<8x1xf32>
    %91 = arith.addf %87, %90 : vector<8x1xf32>
    %92 = math.rsqrt %91 : vector<8x1xf32>
    %93 = vector.broadcast %92 : vector<8x1xf32> to vector<8x32xf32>
    %94 = arith.mulf %89, %93 : vector<8x32xf32>
    %95 = vector.broadcast %49 : vector<1x32xf32> to vector<8x32xf32>
    %96 = arith.mulf %94, %95 : vector<8x32xf32>
    %97 = vector.broadcast %50 : vector<1x32xf32> to vector<8x32xf32>
    %98 = arith.addf %96, %97 : vector<8x32xf32>
    %c0_44 = arith.constant 0 : index
    %c0_45 = arith.constant 0 : index
    %99 = vector.load %arg9[%c0_44, %c0_45] : memref<32x64xf32, #tpu.memory_space<vmem>>, vector<32x64xf32>
    %cst_46 = arith.constant dense<0.000000e+00> : vector<8x64xf32>
    %100 = tpu.matmul %76, %99, %cst_46 {dimension_numbers = #tpu.dot_dimension_numbers<[1], [0], [0], [1], [0, 0, 1, 1], [], []>} : vector<8x32xf32>, vector<32x64xf32>, vector<8x64xf32> -> vector<8x64xf32>
    %c0_47 = arith.constant 0 : index
    %c0_48 = arith.constant 0 : index
    %101 = vector.load %arg10[%c0_47, %c0_48] : memref<1x64xf32, #tpu.memory_space<vmem>>, vector<1x64xf32>
    %102 = vector.broadcast %101 : vector<1x64xf32> to vector<8x64xf32>
    %103 = arith.addf %100, %102 : vector<8x64xf32>
    %c0_49 = arith.constant 0 : index
    %c0_50 = arith.constant 0 : index
    %104 = vector.load %arg11[%c0_49, %c0_50] : memref<32x64xf32, #tpu.memory_space<vmem>>, vector<32x64xf32>
    %cst_51 = arith.constant dense<0.000000e+00> : vector<8x64xf32>
    %105 = tpu.matmul %98, %104, %cst_51 {dimension_numbers = #tpu.dot_dimension_numbers<[1], [0], [0], [1], [0, 0, 1, 1], [], []>} : vector<8x32xf32>, vector<32x64xf32>, vector<8x64xf32> -> vector<8x64xf32>
    %cst_52 = arith.constant 0.000000e+00 : f32
    %106 = vector.broadcast %cst_52 : f32 to vector<8x64xf32>
    %107 = arith.cmpf ogt, %103, %106 : vector<8x64xf32>
    %cst_53 = arith.constant 0.000000e+00 : f32
    %108 = vector.broadcast %cst_53 : f32 to vector<8x64xf32>
    %109 = arith.select %107, %103, %108 : vector<8x64xi1>, vector<8x64xf32>
    %cst_54 = arith.constant 0.000000e+00 : f32
    %110 = vector.broadcast %cst_54 : f32 to vector<8x64xf32>
    %111 = arith.select %107, %105, %110 : vector<8x64xi1>, vector<8x64xf32>
    %c0_55 = arith.constant 0 : index
    %c0_56 = arith.constant 0 : index
    %112 = vector.load %arg12[%c0_55, %c0_56] : memref<64x32xf32, #tpu.memory_space<vmem>>, vector<64x32xf32>
    %cst_57 = arith.constant dense<0.000000e+00> : vector<8x32xf32>
    %113 = tpu.matmul %109, %112, %cst_57 {dimension_numbers = #tpu.dot_dimension_numbers<[1], [0], [0], [1], [0, 0, 1, 1], [], []>} : vector<8x64xf32>, vector<64x32xf32>, vector<8x32xf32> -> vector<8x32xf32>
    %c0_58 = arith.constant 0 : index
    %c0_59 = arith.constant 0 : index
    %114 = vector.load %arg13[%c0_58, %c0_59] : memref<1x32xf32, #tpu.memory_space<vmem>>, vector<1x32xf32>
    %115 = vector.broadcast %114 : vector<1x32xf32> to vector<8x32xf32>
    %116 = arith.addf %113, %115 : vector<8x32xf32>
    %c0_60 = arith.constant 0 : index
    %c0_61 = arith.constant 0 : index
    %117 = vector.load %arg14[%c0_60, %c0_61] : memref<64x32xf32, #tpu.memory_space<vmem>>, vector<64x32xf32>
    %cst_62 = arith.constant dense<0.000000e+00> : vector<8x32xf32>
    %118 = tpu.matmul %111, %117, %cst_62 {dimension_numbers = #tpu.dot_dimension_numbers<[1], [0], [0], [1], [0, 0, 1, 1], [], []>} : vector<8x64xf32>, vector<64x32xf32>, vector<8x32xf32> -> vector<8x32xf32>
    %119 = arith.addf %76, %116 : vector<8x32xf32>
    %120 = arith.addf %98, %118 : vector<8x32xf32>
    %cst_63 = arith.constant dense<0.000000e+00> : vector<8xf32>
    %121 = vector.multi_reduction <add>, %119, %cst_63 [1] : vector<8x32xf32> to vector<8xf32>
    %122 = vector.shape_cast %121 : vector<8xf32> to vector<8x1xf32>
    %cst_64 = arith.constant 3.200000e+01 : f32
    %123 = vector.broadcast %cst_64 : f32 to vector<8x1xf32>
    %124 = arith.divf %122, %123 : vector<8x1xf32>
    %125 = vector.broadcast %124 : vector<8x1xf32> to vector<8x32xf32>
    %126 = arith.subf %119, %125 : vector<8x32xf32>
    %127 = arith.mulf %126, %126 : vector<8x32xf32>
    %cst_65 = arith.constant dense<0.000000e+00> : vector<8xf32>
    %128 = vector.multi_reduction <add>, %127, %cst_65 [1] : vector<8x32xf32> to vector<8xf32>
    %129 = vector.shape_cast %128 : vector<8xf32> to vector<8x1xf32>
    %cst_66 = arith.constant 3.200000e+01 : f32
    %130 = vector.broadcast %cst_66 : f32 to vector<8x1xf32>
    %131 = arith.divf %129, %130 : vector<8x1xf32>
    %132 = vector.broadcast %124 : vector<8x1xf32> to vector<8x32xf32>
    %133 = arith.subf %119, %132 : vector<8x32xf32>
    %cst_67 = arith.constant 9.99999974E-6 : f32
    %134 = vector.broadcast %cst_67 : f32 to vector<8x1xf32>
    %135 = arith.addf %131, %134 : vector<8x1xf32>
    %136 = math.rsqrt %135 : vector<8x1xf32>
    %137 = vector.broadcast %136 : vector<8x1xf32> to vector<8x32xf32>
    %138 = arith.mulf %133, %137 : vector<8x32xf32>
    %139 = vector.broadcast %51 : vector<1x32xf32> to vector<8x32xf32>
    %140 = arith.mulf %138, %139 : vector<8x32xf32>
    %141 = vector.broadcast %52 : vector<1x32xf32> to vector<8x32xf32>
    %142 = arith.addf %140, %141 : vector<8x32xf32>
    %c0_68 = arith.constant 0 : index
    %c0_69 = arith.constant 0 : index
    %c0_70 = arith.constant 0 : index
    %143 = vector.load %arg19[%c0_68, %c0_69, %c0_70] : memref<1x8x32xf32, #tpu.memory_space<vmem>>, vector<1x8x32xf32>
    %144 = vector.shape_cast %143 : vector<1x8x32xf32> to vector<8x32xf32>
    %145 = vector.shape_cast %142 : vector<8x32xf32> to vector<1x8x32xf32>
    tpu.vector_store %arg19[%c0_68, %c0_69, %c0_70], %145 {strides = array<i32>} : memref<1x8x32xf32, #tpu.memory_space<vmem>>, vector<1x8x32xf32>,
    %cst_71 = arith.constant dense<0.000000e+00> : vector<8xf32>
    %146 = vector.multi_reduction <add>, %120, %cst_71 [1] : vector<8x32xf32> to vector<8xf32>
    %147 = vector.shape_cast %146 : vector<8xf32> to vector<8x1xf32>
    %cst_72 = arith.constant 3.200000e+01 : f32
    %148 = vector.broadcast %cst_72 : f32 to vector<8x1xf32>
    %149 = arith.divf %147, %148 : vector<8x1xf32>
    %150 = vector.broadcast %149 : vector<8x1xf32> to vector<8x32xf32>
    %151 = arith.subf %120, %150 : vector<8x32xf32>
    %152 = arith.mulf %151, %151 : vector<8x32xf32>
    %cst_73 = arith.constant dense<0.000000e+00> : vector<8xf32>
    %153 = vector.multi_reduction <add>, %152, %cst_73 [1] : vector<8x32xf32> to vector<8xf32>
    %154 = vector.shape_cast %153 : vector<8xf32> to vector<8x1xf32>
    %cst_74 = arith.constant 3.200000e+01 : f32
    %155 = vector.broadcast %cst_74 : f32 to vector<8x1xf32>
    %156 = arith.divf %154, %155 : vector<8x1xf32>
    %157 = vector.broadcast %149 : vector<8x1xf32> to vector<8x32xf32>
    %158 = arith.subf %120, %157 : vector<8x32xf32>
    %cst_75 = arith.constant 9.99999974E-6 : f32
    %159 = vector.broadcast %cst_75 : f32 to vector<8x1xf32>
    %160 = arith.addf %156, %159 : vector<8x1xf32>
    %161 = math.rsqrt %160 : vector<8x1xf32>
    %162 = vector.broadcast %161 : vector<8x1xf32> to vector<8x32xf32>
    %163 = arith.mulf %158, %162 : vector<8x32xf32>
    %164 = vector.broadcast %51 : vector<1x32xf32> to vector<8x32xf32>
    %165 = arith.mulf %163, %164 : vector<8x32xf32>
    %166 = vector.broadcast %52 : vector<1x32xf32> to vector<8x32xf32>
    %167 = arith.addf %165, %166 : vector<8x32xf32>
    %c0_76 = arith.constant 0 : index
    %c0_77 = arith.constant 0 : index
    %c0_78 = arith.constant 0 : index
    %168 = vector.load %arg20[%c0_76, %c0_77, %c0_78] : memref<1x8x32xf32, #tpu.memory_space<vmem>>, vector<1x8x32xf32>
    %169 = vector.shape_cast %168 : vector<1x8x32xf32> to vector<8x32xf32>
    %170 = vector.shape_cast %167 : vector<8x32xf32> to vector<1x8x32xf32>
    tpu.vector_store %arg20[%c0_76, %c0_77, %c0_78], %170 {strides = array<i32>} : memref<1x8x32xf32, #tpu.memory_space<vmem>>, vector<1x8x32xf32>,
    return
  }
  func.func @transform_0(%arg0: i32) -> (i32, i32, i32) {
    %c0_i32 = arith.constant 0 : i32
    %c0_i32_0 = arith.constant 0 : i32
    %c0_i32_1 = arith.constant 0 : i32
    return %arg0, %c0_i32, %c0_i32_0 : i32, i32, i32
  }
  func.func @transform_1(%arg0: i32) -> (i32, i32, i32) {
    %c0_i32 = arith.constant 0 : i32
    %c0_i32_0 = arith.constant 0 : i32
    %c0_i32_1 = arith.constant 0 : i32
    return %arg0, %c0_i32, %c0_i32_0 : i32, i32, i32
  }
  func.func @transform_2(%arg0: i32) -> (i32, i32) {
    %c0_i32 = arith.constant 0 : i32
    %c0_i32_0 = arith.constant 0 : i32
    %c0_i32_1 = arith.constant 0 : i32
    return %c0_i32, %c0_i32_0 : i32, i32
  }
  func.func @transform_3(%arg0: i32) -> (i32, i32) {
    %c0_i32 = arith.constant 0 : i32
    %c0_i32_0 = arith.constant 0 : i32
    %c0_i32_1 = arith.constant 0 : i32
    return %c0_i32, %c0_i32_0 : i32, i32
  }
  func.func @transform_4(%arg0: i32) -> (i32, i32) {
    %c0_i32 = arith.constant 0 : i32
    %c0_i32_0 = arith.constant 0 : i32
    %c0_i32_1 = arith.constant 0 : i32
    return %c0_i32, %c0_i32_0 : i32, i32
  }
  func.func @transform_5(%arg0: i32) -> (i32, i32) {
    %c0_i32 = arith.constant 0 : i32
    %c0_i32_0 = arith.constant 0 : i32
    %c0_i32_1 = arith.constant 0 : i32
    return %c0_i32, %c0_i32_0 : i32, i32
  }
  func.func @transform_6(%arg0: i32) -> (i32, i32) {
    %c0_i32 = arith.constant 0 : i32
    %c0_i32_0 = arith.constant 0 : i32
    %c0_i32_1 = arith.constant 0 : i32
    return %c0_i32, %c0_i32_0 : i32, i32
  }
  func.func @transform_7(%arg0: i32) -> (i32, i32) {
    %c0_i32 = arith.constant 0 : i32
    %c0_i32_0 = arith.constant 0 : i32
    %c0_i32_1 = arith.constant 0 : i32
    return %c0_i32, %c0_i32_0 : i32, i32
  }
  func.func @transform_8(%arg0: i32) -> (i32, i32) {
    %c0_i32 = arith.constant 0 : i32
    %c0_i32_0 = arith.constant 0 : i32
    %c0_i32_1 = arith.constant 0 : i32
    return %c0_i32, %c0_i32_0 : i32, i32
  }
  func.func @transform_9(%arg0: i32) -> (i32, i32) {
    %c0_i32 = arith.constant 0 : i32
    %c0_i32_0 = arith.constant 0 : i32
    %c0_i32_1 = arith.constant 0 : i32
    return %c0_i32, %c0_i32_0 : i32, i32
  }
  func.func @transform_10(%arg0: i32) -> (i32, i32) {
    %c0_i32 = arith.constant 0 : i32
    %c0_i32_0 = arith.constant 0 : i32
    %c0_i32_1 = arith.constant 0 : i32
    return %c0_i32, %c0_i32_0 : i32, i32
  }
  func.func @transform_11(%arg0: i32) -> (i32, i32) {
    %c0_i32 = arith.constant 0 : i32
    %c0_i32_0 = arith.constant 0 : i32
    %c0_i32_1 = arith.constant 0 : i32
    return %c0_i32, %c0_i32_0 : i32, i32
  }
  func.func @transform_12(%arg0: i32) -> (i32, i32) {
    %c0_i32 = arith.constant 0 : i32
    %c0_i32_0 = arith.constant 0 : i32
    %c0_i32_1 = arith.constant 0 : i32
    return %c0_i32, %c0_i32_0 : i32, i32
  }
  func.func @transform_13(%arg0: i32) -> (i32, i32) {
    %c0_i32 = arith.constant 0 : i32
    %c0_i32_0 = arith.constant 0 : i32
    %c0_i32_1 = arith.constant 0 : i32
    return %c0_i32, %c0_i32_0 : i32, i32
  }
  func.func @transform_14(%arg0: i32) -> (i32, i32) {
    %c0_i32 = arith.constant 0 : i32
    %c0_i32_0 = arith.constant 0 : i32
    %c0_i32_1 = arith.constant 0 : i32
    return %c0_i32, %c0_i32_0 : i32, i32
  }
  func.func @transform_15(%arg0: i32) -> (i32, i32) {
    %c0_i32 = arith.constant 0 : i32
    %c0_i32_0 = arith.constant 0 : i32
    %c0_i32_1 = arith.constant 0 : i32
    return %c0_i32, %c0_i32_0 : i32, i32
  }
  func.func @transform_16(%arg0: i32) -> (i32, i32) {
    %c0_i32 = arith.constant 0 : i32
    %c0_i32_0 = arith.constant 0 : i32
    %c0_i32_1 = arith.constant 0 : i32
    return %c0_i32, %c0_i32_0 : i32, i32
  }
  func.func @transform_17(%arg0: i32) -> (i32, i32) {
    %c0_i32 = arith.constant 0 : i32
    %c0_i32_0 = arith.constant 0 : i32
    %c0_i32_1 = arith.constant 0 : i32
    return %c0_i32, %c0_i32_0 : i32, i32
  }
  func.func @transform_18(%arg0: i32) -> (i32, i32, i32) {
    %c0_i32 = arith.constant 0 : i32
    %c0_i32_0 = arith.constant 0 : i32
    %c0_i32_1 = arith.constant 0 : i32
    return %arg0, %c0_i32, %c0_i32_0 : i32, i32, i32
  }
  func.func @transform_19(%arg0: i32) -> (i32, i32, i32) {
    %c0_i32 = arith.constant 0 : i32
    %c0_i32_0 = arith.constant 0 : i32
    %c0_i32_1 = arith.constant 0 : i32
    return %arg0, %c0_i32, %c0_i32_0 : i32, i32, i32
  }
}

</mosaic_0001>

<bundles_post_ra>
// kernel: tpu_custom_call.1
= control target key start
LH: loop header
LB: loop body
LE: loop exit
PB: predicated region body
PF: predicated region fallthrough
CT: control target
= control target key end

     0   :  { %s4907_s0 = inlined_call_operand.hbm [shape: f32[2,8,32], index: 0, kind: input, shape index: {}]   ;;  %s4908_s1 = inlined_call_operand.hbm [shape: f32[2,8,32], index: 1, kind: input, shape index: {}]   ;;  %s4909_s2 = inlined_call_operand.vmem [shape: f32[32,96], index: 2, kind: input, shape index: {}]   ;;  %s4910_s3 = inlined_call_operand.vmem [shape: f32[1,96], index: 3, kind: input, shape index: {}]   ;;  %s4911_s4 = inlined_call_operand.vmem [shape: f32[32,32], index: 4, kind: input, shape index: {}]   ;;  %s4912_s5 = inlined_call_operand.vmem [shape: f32[32,32], index: 5, kind: input, shape index: {}]   ;;  %s4913_s6 = inlined_call_operand.vmem [shape: f32[1,32], index: 6, kind: input, shape index: {}]   ;;  %s4914_s7 = inlined_call_operand.vmem [shape: f32[32,32], index: 7, kind: input, shape index: {}]   ;;  %s4915_s8 = inlined_call_operand.vmem [shape: f32[32,64], index: 8, kind: input, shape index: {}]   ;;  %s4916_s9 = inlined_call_operand.vmem [shape: f32[1,64], index: 9, kind: input, shape index: {}]   ;;  %s4917_s10 = inlined_call_operand.hbm [shape: f32[32,64], index: 10, kind: input, shape index: {}]   ;;  %s4918_s11 = inlined_call_operand.vmem [shape: f32[64,32], index: 11, kind: input, shape index: {}]   ;;  %s4919_s12 = inlined_call_operand.vmem [shape: f32[1,32], index: 12, kind: input, shape index: {}]   ;;  %s4920_s13 = inlined_call_operand.vmem [shape: f32[64,32], index: 13, kind: input, shape index: {}]   ;;  %s4921_s14 = inlined_call_operand.vmem [shape: f32[1,32], index: 14, kind: input, shape index: {}]   ;;  %s4922_s15 = inlined_call_operand.vmem [shape: f32[1,32], index: 15, kind: input, shape index: {}]   ;;  %s4923_s16 = inlined_call_operand.vmem [shape: f32[1,32], index: 16, kind: input, shape index: {}]   ;;  %s4924_s17 = inlined_call_operand.vmem [shape: f32[1,32], index: 17, kind: input, shape index: {}]   ;;  %s4925_s18 = inlined_call_operand.hbm [shape: f32[2,8,32], index: 18, kind: output, shape index: {0}]   ;;  %s4926_s19 = inlined_call_operand.hbm [shape: f32[2,8,32], index: 19, kind: output, shape index: {1}]  }
   0x1   :  { %4946 = sst [smem:[#allocation22_spill]] %s4907_s0 }
   0x2   :  { %4947 = sst [smem:[#allocation23_spill]] %s4908_s1 }
   0x3   :  { %4948 = sst [smem:[#allocation24_spill]] %s4909_s2 }
   0x4   :  { %4949 = sst [smem:[#allocation25_spill]] %s4910_s3 }
   0x5   :  { %4950 = sst [smem:[#allocation26_spill]] %s4916_s9 }
   0x6   :  { %4951 = sst [smem:[#allocation27_spill]] %s4917_s10 }
   0x7   :  { %4952 = sst [smem:[#allocation28_spill]] %s4919_s12 }
   0x8   :  { %4953 = sst [smem:[#allocation29_spill]] %s4920_s13 }
   0x9   :  { %4954 = sst [smem:[#allocation30_spill]] %s4923_s16 }
   0xa   :  { %4955 = sst [smem:[#allocation31_spill]] %s4924_s17 }
   0xb   :  { %4956 = sst [smem:[#allocation32_spill]] %s4925_s18 }
   0xc   :  { %4957 = sst [smem:[#allocation33_spill]] %s4926_s19 }
   0xd   :  { %25 = vsyncpa [#allocation3], 0 }
   0xe   :  { %27 = vsyncpa [#allocation3 + $0x1], 0 }
   0xf   :  { %28 = vsyncpa [#allocation6], 0 }
  0x10   :  { %30 = vsyncpa [#allocation6 + $0x1], 0 }
  0x11   :  { %31 = vsyncpa [#allocation4], 0 }
  0x12   :  { %33 = vsyncpa [#allocation4 + $0x1], 0 }
  0x13   :  { %34 = vsyncpa [#allocation10], 0 }
  0x14   :  { %36 = vsyncpa [#allocation10 + $0x1], 0  ;;  %s4215_s0 = smov 0   ;;  %s4217_s30 = smov 0  }
  0x15   :  { %s4219_s20 = smov 0   ;;  %s4221_s21 = smov 0  }
  0x16 LB: > { %4958 = sst [smem:[#allocation16_spill]] %s4081_s0  ;;  %s4236_s1 = sadd.s32 4294967295, %s4093_s21   ;;  %s4093_s21 = sphi %s4221_s21, %s4995_s21   ;;  %s4089_s20 = sphi %s4219_s20, %s4997_s20   ;;  %s4085_s30 = sphi %s4217_s30, %s4999_s30   ;;  %s4081_s0 = sphi %s4215_s0, %s4998_s0  }
  0x17   : > { %4959 = sst [smem:[#allocation17_spill]] %s4089_s20  ;;  %s3433_s22 = sadd.s32 4294967294, %s4093_s21  }
  0x18   : > { %p62_p0 = scmp.ne.s32.totalorder %s4085_s30, %s4081_s0  ;;  %p4936_p1 = scmp.eq.s32.totalorder %s4236_s1, 0 }
  0x19   : > { %p454_p3 = scmp.eq.s32.totalorder %s3433_s22, 1  ;;  %p3434_p5 = scmp.ge.s32.totalorder %s4093_s21, 1 }
  0x1a   : > { %p4245_p4 = por %p4936_p1, %p62_p0  ;;  %p487_p7 = scmp.lt.s32.totalorder %s4093_s21, 3 }
  0x1b   : > { %p4250_p6 = por %p454_p3, %p62_p0  ;;  %s4095_s25 = smov [#allocation7]  }
  0x1c   : > { %s4960_s2 = scalar_select %p4245_p4, 1, 0 }
  0x1d   : > { %s4961_s23 = scalar_select %p4250_p6, 1, 0 }
  0x1e   : > { %p4255_p8 = pnand %p3434_p5, %p487_p7  ;;  %s523_s3 = sshll.u32 %s4095_s25, 4  ;;  %s4259_s3 = int_to_ptr.vmem [resolvable:$true] %s523_s3 }
  0x1f   : > { %4962 = sst [smem:[#allocation18_spill]] %s4961_s23  ;;  %s4271_s27 = sadd.s32 1, %s4093_s21  }
  0x20   : > { %s4963_s24 = scalar_select %p4255_p8, 1, 0 }
  0x21   : > { %p3805_p9 = pneg %p4255_p8  ;;  %4965 = sst [smem:[#allocation19_spill]] %s4271_s27 }
  0x22   : > { %s49_s28 = sadd.s32 1, %s4089_s20  ;;  %s46_s29 = ssub.s32 %s4093_s21, %s4271_s27 }
  0x23   : > { %p4266_p11 = pnand %p3805_p9, %p4936_p1  ;;  %s4966_s10 = sld [smem:[#allocation27_spill]] }
  0x25   : > { %p3901_p13 = pneg %p4266_p11 }
  0x29   : > { %s3899_s25 = scalar_lea.hbm %s4966_s10, 512 }
  0x2a   : > { %p3900_p12 = scmp.ne.s32.totalorder %s4966_s10, %s3899_s25  ;;  %p3906_p5 = scmp.lt.u32.totalorder %s3899_s25, %s4966_s10 }
  0x2c   : > { %p3902_p0 = pnand %p3901_p13, %p3900_p12 }
  0x2e   : > { %p3903_p3 = pneg %p3902_p0 }
  0x30   : > { %p3908_p7 = pnand %p3906_p5, %p3903_p3 }
  0x32   : > { %3911 = shalt.err (!%p3908_p7)
}
  0x33   : > { %s3912_s27 = scalar_lea.vmem %s4259_s3, 512  ;;  %p3920_p2 = scmp.lt.s32.totalorder %s4259_s3, %s4259_s3 }
  0x34   : > { %p3913_p9 = scmp.ne.s32.totalorder %s4259_s3, %s3912_s27  ;;  %p3921_p6 = scmp.lt.s32.totalorder %s3912_s27, %s3912_s27 }
  0x36   : > { %p3915_p10 = pnand %p3913_p9, %p3901_p13  ;;  %p3922_p4 = por %p3921_p6, %p3920_p2 }
  0x38   : > { %p3916_p1 = pneg %p3915_p10 }
  0x3a   : > { %p3923_p8 = pnand %p3922_p4, %p3916_p1 }
  0x3c   : > { %3926 = shalt.err (!%p3923_p8)
}
  0x3d   : > { %s4096_s19 = smov 128   ;;  %s4097_s17 = smov 8  }
  0x3e   : > { %3808 = dma.hbm_to_vmem [thread:$0]  (!%p4266_p11), %s4966_s10, 512, %s4259_s3, [#allocation6], %s4096_s19, %s4096_s19, %s4097_s17  }
  0x3f   : > { %p47_p2 = scmp.eq.s32.totalorder %s46_s29, 0  ;;  %p56_p1 = scmp.ne.s32.totalorder %s4089_s20, %s4085_s30 }
  0x40   : > { %p57_p4 = scmp.eq.s32.totalorder %s4093_s21, 0  ;;  %p3824_p6 = scmp.lt.s32.totalorder %s4093_s21, 2 }
  0x41   : > { %s4302_s23 = scalar_select %p47_p2, %s4089_s20, %s49_s28  }
  0x42   : > { %p58_p8 = por %p57_p4, %p56_p1  ;;  %p4968_p10 = scmp.eq.s32.totalorder %s4236_s1, 1 }
  0x43   : > { %4967 = sst [smem:[#allocation20_spill]] %s4302_s23  ;;  %s558_s22 = sand.u32 1, %s4089_s20  }
  0x44   : > { %p4306_p12 = por %p4968_p10, %p56_p1  ;;  %s3438_s25 = sshll.u32 %s4093_s21, 7 }
  0x45   : > { %s4312_s16 = sshll.u32 %s558_s22, 3  ;;  %s4971_s18 = sld [smem:[#allocation22_spill]] }
  0x46   : > { %s4969_s27 = scalar_select %p4306_p12, 1, 0 }
  0x47   : > { %s562_s28 = scalar_lea.vmem [#allocation2], %s4312_s16  ;;  %p4320_p11 = pnand %p3824_p6, %p58_p8 }
  0x48   : > { %4970 = sst [smem:[#allocation21_spill]] %s4969_s27  ;;  %s569_s29 = sshll.u32 %s562_s28, 4  ;;  %s4324_s29 = int_to_ptr.vmem [resolvable:$true] %s569_s29 }
  0x49   : > { %s4973_s12 = sld [smem:[#allocation23_spill]]  ;;  %s559_s10 = scalar_lea.sflag [#allocation3], %s558_s22 }
  0x4a   : > { %p3929_p0 = pneg %p4320_p11 }
  0x4b   : > { %s4317_s3 = scalar_lea.hbm %s4971_s18, %s3438_s25  ;;  %s3932_s27 = scalar_lea.hbm %s4971_s18, 256 }
  0x4c   : > { %s3927_s23 = scalar_lea.hbm %s4317_s3, 128  ;;  %p3933_p7 = scmp.lt.u32.totalorder %s4317_s3, %s4971_s18 }
  0x4d   : > { %p3928_p13 = scmp.ne.s32.totalorder %s4317_s3, %s3927_s23  ;;  %p3934_p9 = scmp.lt.u32.totalorder %s3932_s27, %s3927_s23 }
  0x4e   : > { %p3936_p1 = scmp.lt.u32.totalorder %s3927_s23, %s4317_s3 }
  0x4f   : > { %s4329_s26 = scalar_lea.hbm %s4973_s12, %s3438_s25  ;;  %p3930_p3 = pnand %p3929_p0, %p3928_p13 }
  0x50   : > { %p3935_p2 = por %p3934_p9, %p3933_p7 }
  0x51   : > { %p3931_p5 = pneg %p3930_p3 }
  0x52   : > { %p3937_p4 = por %p3936_p1, %p3935_p2 }
  0x54   : > { %p3938_p6 = pnand %p3937_p4, %p3931_p5 }
  0x56   : > { %3941 = shalt.err (!%p3938_p6)
}
  0x57   : > { %s3942_s22 = scalar_lea.vmem %s4324_s29, 128  ;;  %s4098_s20 = smov [#allocation2]  }
  0x58   : > { %p3943_p8 = scmp.ne.s32.totalorder %s4324_s29, %s3942_s22  ;;  %s3947_s25 = sshll.u32 %s4098_s20, 4  ;;  %s3948_s25 = int_to_ptr.vmem [resolvable:$false] %s3947_s25 }
  0x59   : > { %s3949_s9 = scalar_lea.vmem %s3948_s25, 256  ;;  %p3950_p3 = scmp.lt.s32.totalorder %s4324_s29, %s3948_s25 }
  0x5a   : > { %p3945_p10 = pnand %p3943_p8, %p3929_p0  ;;  %p3951_p7 = scmp.lt.s32.totalorder %s3949_s9, %s3942_s22 }
  0x5c   : > { %p3946_p13 = pneg %p3945_p10  ;;  %p3952_p9 = por %p3951_p7, %p3950_p3 }
  0x5e   : > { %p3953_p2 = pnand %p3952_p9, %p3946_p13 }
  0x60   : > { %3956 = shalt.err (!%p3953_p2)
}
  0x61   : > { %3812 = dma.hbm_to_vmem [thread:$0]  (!%p4320_p11), %s4317_s3, 128, %s4324_s29, %s559_s10  }
  0x62   : > { %s576_s13 = sand.u32 1, %s4093_s21   ;;  %s580_s23 = scalar_lea.vmem [#allocation5], %s4312_s16 }
  0x63   : > { %s587_s27 = sshll.u32 %s580_s23, 4  ;;  %s577_s17 = scalar_lea.sflag [#allocation6], %s576_s13  ;;  %s588_s27 = int_to_ptr.vmem [resolvable:$true] %s587_s27 }
  0x64   : > { %s3957_s0 = scalar_lea.hbm %s4329_s26, 128  ;;  %s3962_s20 = scalar_lea.hbm %s4973_s12, 256 }
  0x65   : > { %p3958_p5 = scmp.ne.s32.totalorder %s4329_s26, %s3957_s0  ;;  %p3963_p6 = scmp.lt.u32.totalorder %s4329_s26, %s4973_s12 }
  0x66   : > { %p3964_p8 = scmp.lt.u32.totalorder %s3962_s20, %s3957_s0  ;;  %p3966_p13 = scmp.lt.u32.totalorder %s3957_s0, %s4329_s26 }
  0x67   : > { %p3960_p1 = pnand %p3958_p5, %p3929_p0 }
  0x68   : > { %p3965_p10 = por %p3964_p8, %p3963_p6 }
  0x69   : > { %p3961_p4 = pneg %p3960_p1 }
  0x6a   : > { %p3967_p3 = por %p3966_p13, %p3965_p10 }
  0x6c   : > { %p3968_p7 = pnand %p3967_p3, %p3961_p4 }
  0x6e   : > { %3971 = shalt.err (!%p3968_p7)
}
  0x6f   : > { %s3972_s10 = scalar_lea.vmem %s588_s27, 128  ;;  %s4099_s16 = smov [#allocation5]  }
  0x70   : > { %p3973_p9 = scmp.ne.s32.totalorder %s588_s27, %s3972_s10  ;;  %s3977_s3 = sshll.u32 %s4099_s16, 4  ;;  %s3978_s3 = int_to_ptr.vmem [resolvable:$false] %s3977_s3 }
  0x71   : > { %s3979_s29 = scalar_lea.vmem %s3978_s3, 256  ;;  %p3980_p1 = scmp.lt.s32.totalorder %s588_s27, %s3978_s3 }
  0x72   : > { %p3975_p2 = pnand %p3973_p9, %p3929_p0  ;;  %p3981_p12 = scmp.lt.s32.totalorder %s3979_s29, %s3972_s10 }
  0x74   : > { %p3976_p5 = pneg %p3975_p2  ;;  %p3982_p6 = por %p3981_p12, %p3980_p1 }
  0x76   : > { %p3983_p8 = pnand %p3982_p6, %p3976_p5 }
  0x78   : > { %3986 = shalt.err (!%p3983_p8)
}
  0x79   : > { %3815 = dma.hbm_to_vmem [thread:$0]  (!%p4320_p11), %s4329_s26, 128, %s588_s27, %s577_s17  }
  0x7a   : > { %p4974_p4 = scmp.ne.s32.totalorder %s4963_s24, 0 }
  0x7b   : > { %s4380_s13 = sand.u32 (!%p4974_p4), 1, %s4085_s30   ;;  %p4975_p12 = scmp.ne.s32.totalorder (!%p4974_p4), %s4960_s2, 0 }
  0x7c   : > { %596 = sbr.rel (%p4974_p4) target bundleno = 2820 (0xb04), region = 92  ;;  %s4383_s23 = sshll.u32 (!%p4974_p4), %s4380_s13, 3 }
  0x7d   : > { %s599_s0 = scalar_lea.sflag (!%p4974_p4), [#allocation3], %s4380_s13  ;;  %s602_s28 = scalar_lea.vmem (!%p4974_p4), [#allocation2], %s4383_s23 }
  0x83   : > { %4060 = dma.done.wait (%p4975_p12), %s599_s0, 128  }
  0x84   : > { %4062 = vsyncadd (%p4975_p12), %s599_s0, 4294967168  ;;  %s607_s24 = sand.u32 1, %s4236_s1   ;;  %s611_s26 = scalar_lea.vmem [#allocation5], %s4383_s23 }
  0x85   : > { %s608_s19 = scalar_lea.sflag [#allocation6], %s607_s24 }
  0x86   : > { %4064 = dma.done.wait (%p4975_p12), %s608_s19, 128  }
  0x87   : > { %4066 = vsyncadd (%p4975_p12), %s608_s19, 4294967168  ;;  %p4976_p11 = scmp.eq.s32.totalorder %s4236_s1, 0 }
  0x89   : > { %4068 = dma.done.wait (%p4976_p11), [#allocation6], 512   ;;  %p4977_p0 = pmov %p4976_p11 }
  0x8a   : > { %v4100_v0 = vmov 0.0|0.0   ;;  %vm4101_vm0 = vmmov 0   ;;  %v4102_v1 = vmov 0.0   ;;  %s4978_s17 = sld [smem:[#allocation24_spill]]  ;;  %v4420_v8 = vld [vmem:[%s602_s28] sm:$0xff]  ;;  %vm693_vm1 = vcmask 261120  }
  0x8b   : > { %4070 = vsyncadd (%p4977_p0), [#allocation6], 4294966784  ;;  %3733 = vmatprep.subr.bf16.mxu0 %v4100_v0  ;;  %3577 = vmatprep.mubr.msk.f32.mxu0 %vm4101_vm0, %v4102_v1  ;;  %s4979_s0 = sld [smem:[#allocation25_spill]]  ;;  %s4103_s24 = smov 104   ;;  %v767_v13 = vld [vmem:[%s4911_s4] sm:$0xff]  ;;  %v768_v14 = vld [vmem:[%s4911_s4 + $0x8] sm:$0xff]  ;;  %v859_v25 = vlaneseq }
  0x8c   : > { %3739 = vmatprep.subr.bf16.mxu1 %v4100_v0  ;;  %3588 = vmatprep.mubr.msk.f32.mxu1 %vm4101_vm0, %v4102_v1  ;;  %s4104_s28 = smov 120   ;;  %s4105_s19 = smov 96   ;;  %v3740_v15 = vpack.c.bf16 %v768_v14, %v767_v13  ;;  %v769_v16 = vld [vmem:[%s4911_s4 + $0x10] sm:$0xff]  ;;  %v770_v17 = vld [vmem:[%s4911_s4 + $0x18] sm:$0xff]  ;;  %v4107_v23 = vmov 1983009808  }
  0x8d   : > { %s4106_s2 = smov 112   ;;  %v3743_v18 = vpack.c.bf16 %v770_v17, %v769_v16  ;;  %v4462_v22 = vld [vmem:[%s611_s26] sm:$0xff]  ;;  %v857_v24 = vunpack.c.l.s4 %v4107_v23  ;;  %v860_v27 = vshrl.u32 %v859_v25, 7  ;;  %v4108_v28 = vmov 1934713408   ;;  %s4109_s26 = smov 64  }
  0x8e   : > { %3741 = vmatpush3.bf16.msra.mxu1 %v3740_v15  ;;  %v889_v29 = vunpack.c.l.s4 %v4108_v28  ;;  %vm1432_vm2 = vcmask 64512   ;;  %s4110_s16 = smov 16   ;;  %s4111_s3 = smov 8   ;;  %vm2522_vm3 = vcmask 130048   ;;  %vm2524_vm4 = vcmask 195584  }
  0x8f   : > { %3742 = vmatprep.subr.bf16.mxu1 %v4100_v0  ;;  %v858_v26 = vunpack.c.0.s8 %v857_v24  ;;  %s4981_s25 = sld [smem:[#allocation26_spill]]  ;;  %vm3066_vm5 = vcmask 523264   ;;  %s4983_s29 = sld [smem:[#allocation30_spill]] }
  0x90   : > { %v682_v2 = vld [vmem:[%s4978_s17] sm:$0xff]  ;;  %v683_v3 = vld [vmem:[%s4978_s17 + $0x8] sm:$0xff]  ;;  %v684_v4 = vld [vmem:[%s4978_s17 + $0x10] sm:$0xff]  ;;  %v890_v35 = vunpack.c.0.s8 %v889_v29  ;;  %s4945_s27 = sshll.u32 %s4236_s1, 7  ;;  %s672_s22 = scalar_lea.vmem [#allocation8], %s4383_s23 }
  0x91   : > { %v3734_v5 = vpack.c.bf16 %v683_v3, %v682_v2  ;;  %v685_v6 = vld [vmem:[%s4978_s17 + $0x18] sm:$0xff]  ;;  %v3447_v9 = vld [vmem:[%s4979_s0] ss:$0 sm:$0xff]  ;;  %v4474_v32 = vsub.s32 %v858_v26, %v860_v27  ;;  %s3286_s20 = sshll.u32 %s672_s22, 4  ;;  %s4986_s10 = sld [smem:[#allocation32_spill]]  ;;  %s4824_s20 = int_to_ptr.vmem [resolvable:$true] %s3286_s20 }
  0x92   : > { %v3737_v7 = vpack.c.bf16 %v685_v6, %v684_v4  ;;  %3744 = vmatpush3.bf16.msra.mxu1 %v3743_v18  ;;  %v4484_v40 = vsub.s32 %v890_v35, %v860_v27  ;;  %s3987_s0 = scalar_lea.vmem %s4824_s20, 128 }
  0x93   : > { %3735 = vmatpush3.bf16.msra.mxu0 %v3734_v5  ;;  %3596 = vmatprep.subr.mxu1 %v4102_v1  ;;  %p3988_p10 = scmp.ne.s32.totalorder %s4824_s20, %s3987_s0 }
  0x94   : > { %3736 = vmatprep.subr.bf16.mxu0 %v4100_v0 }
  0x95   : > { %3589 = vmatmul.mubr.msk.f32.vlgmr.msra.gmra.mrb[0].mxu1 %vm693_vm1, %v4462_v22 }
  0x96   : > { %3598 = vmatprep.mubr.msk.f32.mxu1 %vm4101_vm0, %v4102_v1 }
  0x97   : > { %3738 = vmatpush3.bf16.msra.mxu0 %v3737_v7 }
  0x98   : > { %3591 = vmatprep.subr.mxu0 %v4102_v1 }
  0x9a   : > { %3578 = vmatmul.mubr.msk.f32.vlgmr.msra.gmra.mrb[0].mxu0 %vm693_vm1, %v4420_v8 }
  0x9b   : > { %3593 = vmatprep.mubr.msk.f32.mxu0 %vm4101_vm0, %v4102_v1 }
 0x16d   : > { %v763_v10 = vpop.f32.mrb[0].mxu0 }
 0x16e   : > { %v4430_v11 = vadd.f32 %v3447_v9, %v763_v10  ;;  %v3579_v12 = vpop.f32.mrb[1].mxu0 }
 0x170   : > { %851 = vrot.lane.b32.xlu1 %v4430_v11, %s4103_s24  ;;  %845 = vrot.lane.b32.xlu0 %v4430_v11, %s4104_s28 }
 0x174   : > { %990 = vrot.lane.b32.xlu1 %v4430_v11, %s4105_s19  ;;  %848 = vrot.lane.b32.xlu0 %v4430_v11, %s4106_s2 }
 0x1e2   : > { %v4452_v19 = vpop.permute.xlu0 %845  ;;  %v4456_v20 = vpop.permute.xlu1 %851 }
 0x1e3   : > { %992 = vrot.lane.b32.xlu0 %v4452_v19, %s4105_s19  ;;  %v870_v33 = vcombine.low %v4452_v19, %v4456_v20  ;;  %v871_v34 = vcombine.high %v4452_v19, %v4456_v20 }
 0x1e5   : > { %v878_v38 = vrot.slane %v870_v33, %v4474_v32  ;;  %v885_v39 = vrot.slane %v871_v34, %v4474_v32 }
 0x1e6   : > { %v4458_v21 = vpop.permute.xlu0 %848  ;;  %v991_v41 = vpop.permute.xlu1 %990 }
 0x1e7   : > { %996 = vrot.lane.b32.xlu0 %v4456_v20, %s4105_s19  ;;  %994 = vrot.lane.b32.xlu1 %v4458_v21, %s4105_s19  ;;  %v854_v30 = vcombine.low %v4430_v11, %v4458_v21  ;;  %v855_v31 = vcombine.high %v4430_v11, %v4458_v21  ;;  %s4984_s19 = sld [smem:[#allocation31_spill]] }
 0x1e9   : > { %v862_v36 = vrot.slane %v854_v30, %v4474_v32  ;;  %v869_v37 = vrot.slane %v855_v31, %v4474_v32 }
 0x1eb   : > { %v886_v42 = vcombine.low %v862_v36, %v878_v38  ;;  %v887_v43 = vcombine.high %v862_v36, %v878_v38  ;;  %v902_v44 = vcombine.low %v869_v37, %v885_v39  ;;  %v903_v45 = vcombine.high %v869_v37, %v885_v39 }
 0x1ed   : > { %v894_v47 = vrot.slane %v886_v42, %v4484_v40  ;;  %v901_v48 = vrot.slane %v887_v43, %v4484_v40  ;;  %v910_v49 = vrot.slane %v902_v44, %v4484_v40  ;;  %v917_v50 = vrot.slane %v903_v45, %v4484_v40 }
 0x1ef   : > { %v922_v61 = vcombine.low %v894_v47, %v901_v48  ;;  %v3450_v62 = vcombine.high %v894_v47, %v901_v48  ;;  %v938_v63 = vcombine.low %v910_v49, %v917_v50  ;;  %v3451_v2 = vcombine.high %v910_v49, %v917_v50 }
 0x1f1   : > { %v929_v13 = vrot.slane %v922_v61, %v4474_v32  ;;  %v937_v14 = vrot.slane %v3450_v62, %v4474_v32  ;;  %v945_v15 = vrot.slane %v938_v63, %v4474_v32  ;;  %v953_v16 = vrot.slane %v3451_v2, %v4474_v32 }
 0x1f3   : > { %v954_v29 = vcombine.low %v929_v13, %v937_v14  ;;  %v970_v30 = vcombine.low %v945_v15, %v953_v16  ;;  %v955_v38 = vcombine.high %v929_v13, %v937_v14  ;;  %v971_v42 = vcombine.high %v945_v15, %v953_v16 }
 0x1f5   : > { %v962_v39 = vrot.slane %v954_v29, %v4484_v40  ;;  %v969_v47 = vrot.slane %v955_v38, %v4484_v40  ;;  %v985_v50 = vrot.slane %v971_v42, %v4484_v40 }
 0x255   : > { %v993_v46 = vpop.permute.xlu0 %992 }
 0x259   : > { %v995_v51 = vpop.permute.xlu1 %994  ;;  %v997_v52 = vpop.permute.xlu0 %996 }
 0x25a   : > { %v1002_v53 = vcombine.low %v991_v41, %v995_v51  ;;  %v1003_v54 = vcombine.high %v991_v41, %v995_v51  ;;  %v1018_v55 = vcombine.low %v993_v46, %v997_v52  ;;  %v1019_v56 = vcombine.high %v993_v46, %v997_v52 }
 0x25b   : > { %v978_v41 = vrot.slane %v970_v30, %v4484_v40 }
 0x25c   : > { %v1010_v57 = vrot.slane %v1002_v53, %v4474_v32  ;;  %v1017_v58 = vrot.slane %v1003_v54, %v4474_v32  ;;  %v1026_v59 = vrot.slane %v1018_v55, %v4474_v32  ;;  %v1033_v60 = vrot.slane %v1019_v56, %v4474_v32  ;;  %v4534_v55 = vpop.f32.mrb[0].mxu1 }
 0x25d   : > { %v986_v48 = vcombine.low %v962_v39, %v978_v41  ;;  %v987_v49 = vcombine.high %v962_v39, %v978_v41  ;;  %v988_v53 = vcombine.low %v969_v47, %v985_v50  ;;  %v989_v54 = vcombine.high %v969_v47, %v985_v50  ;;  %v3590_v56 = vpop.f32.mrb[1].mxu1 }
 0x25e   : > { %v1034_v3 = vcombine.low %v1010_v57, %v1026_v59  ;;  %v1035_v4 = vcombine.high %v1010_v57, %v1026_v59  ;;  %v1050_v5 = vcombine.low %v1017_v58, %v1033_v60  ;;  %v1051_v6 = vcombine.high %v1017_v58, %v1033_v60 }
 0x260   : > { %v1042_v7 = vrot.slane %v1034_v3, %v4484_v40  ;;  %v1049_v9 = vrot.slane %v1035_v4, %v4484_v40  ;;  %v1058_v10 = vrot.slane %v1050_v5, %v4484_v40  ;;  %v1065_v12 = vrot.slane %v1051_v6, %v4484_v40 }
 0x262   : > { %v1070_v17 = vcombine.low %v1042_v7, %v1049_v9  ;;  %v3452_v18 = vcombine.high %v1042_v7, %v1049_v9  ;;  %v1086_v23 = vcombine.low %v1058_v10, %v1065_v12  ;;  %v3453_v24 = vcombine.high %v1058_v10, %v1065_v12 }
 0x264   : > { %v1077_v25 = vrot.slane %v1070_v17, %v4474_v32  ;;  %v1085_v26 = vrot.slane %v3452_v18, %v4474_v32  ;;  %v1093_v27 = vrot.slane %v1086_v23, %v4474_v32  ;;  %v1101_v28 = vrot.slane %v3453_v24, %v4474_v32 }
 0x266   : > { %v1102_v31 = vcombine.low %v1077_v25, %v1085_v26  ;;  %v1103_v33 = vcombine.high %v1077_v25, %v1085_v26  ;;  %v1118_v34 = vcombine.low %v1093_v27, %v1101_v28  ;;  %v1119_v35 = vcombine.high %v1093_v27, %v1101_v28 }
 0x268   : > { %v1110_v36 = vrot.slane %v1102_v31, %v4484_v40  ;;  %v1126_v37 = vrot.slane %v1118_v34, %v4484_v40  ;;  %v1117_v45 = vrot.slane %v1103_v33, %v4484_v40  ;;  %v1133_v46 = vrot.slane %v1119_v35, %v4484_v40 }
 0x26a   : > { %v1134_v43 = vcombine.low %v1110_v36, %v1126_v37  ;;  %v1135_v44 = vcombine.high %v1110_v36, %v1126_v37  ;;  %v1136_v51 = vcombine.low %v1117_v45, %v1133_v46  ;;  %v1137_v52 = vcombine.high %v1117_v45, %v1133_v46 }
 0x26c   : > { %3592 = vmatpush3.xpose.msk.msra.mxu0 %vm1432_vm2, %v1134_v43  ;;  %3597 = vmatpush3.xpose.msk.msra.mxu1 %vm1432_vm2, %v1135_v44 }
 0x26d   : > { %3601 = vmatprep.subr.mxu0 %v4102_v1  ;;  %3606 = vmatprep.subr.mxu1 %v4102_v1 }
 0x26f   : > { %3594 = vmatmul.mubr.msk.f32.vlgmr.msra.gmra.mrb[2].mxu0 %vm1432_vm2, %v986_v48  ;;  %3599 = vmatmul.mubr.msk.f32.vlgmr.msra.gmra.mrb[2].mxu1 %vm1432_vm2, %v987_v49 }
 0x270   : > { %3602 = vmatpush3.xpose.msk.msra.mxu0 %vm1432_vm2, %v1136_v51  ;;  %3607 = vmatpush3.xpose.msk.msra.mxu1 %vm1432_vm2, %v1137_v52 }
 0x271   : > { %3603 = vmatprep.mubr.msk.f32.mxu0 %vm4101_vm0, %v4102_v1  ;;  %3608 = vmatprep.mubr.msk.f32.mxu1 %vm4101_vm0, %v4102_v1 }
 0x272   : > { %3611 = vmatprep.subr.mxu0 %v4102_v1  ;;  %3616 = vmatprep.subr.mxu1 %v4102_v1 }
 0x273   : > { %3604 = vmatmul.mubr.msk.f32.vlgmr.msra.gmra.mrb[4].mxu0 %vm1432_vm2, %v988_v53  ;;  %3609 = vmatmul.mubr.msk.f32.vlgmr.msra.gmra.mrb[4].mxu1 %vm1432_vm2, %v989_v54 }
 0x274   : > { %3613 = vmatprep.mubr.msk.f32.mxu0 %vm4101_vm0, %v4102_v1  ;;  %3618 = vmatprep.mubr.msk.f32.mxu1 %vm4101_vm0, %v4102_v1 }
 0x342   : > { %v1505_v57 = vpop.f32.mrb[2].mxu0  ;;  %v1581_v58 = vpop.f32.mrb[2].mxu1 }
 0x343   : > { %v1737_v59 = vmul.f32 0.35355338, %v1505_v57  ;;  %v1738_v60 = vmul.f32 0.35355338, %v1581_v58  ;;  %v3595_v61 = vpop.f32.mrb[3].mxu0  ;;  %v3600_v62 = vpop.f32.mrb[3].mxu1 }
 0x345   : > { %v1744_v63 = vsel %vm1432_vm2, %v1738_v60, -inf  ;;  %v1741_v2 = vsel %vm1432_vm2, %v1737_v59, -inf }
 0x346   : > { %1745 = vmax.xlane.f32.xlu0 %v1744_v63  ;;  %v1733_v3 = vpop.f32.mrb[4].mxu1  ;;  %1742 = vmax.xlane.f32.xlu1 %v1741_v2  ;;  %v1657_v4 = vpop.f32.mrb[4].mxu0 }
 0x347   : > { %v1740_v5 = vmul.f32 0.35355338, %v1733_v3  ;;  %v1739_v6 = vmul.f32 0.35355338, %v1657_v4  ;;  %v3605_v7 = vpop.f32.mrb[5].mxu0  ;;  %v3610_v9 = vpop.f32.mrb[5].mxu1 }
 0x349   : > { %v1750_v10 = vsel %vm1432_vm2, %v1740_v5, -inf  ;;  %v1747_v12 = vsel %vm1432_vm2, %v1739_v6, -inf }
 0x34a   : > { %1751 = vmax.xlane.f32.xlu1 %v1750_v10  ;;  %1748 = vmax.xlane.f32.xlu0 %v1747_v12 }
 0x35b   : > { %1140 = vrot.lane.b32.xlu1 %v4452_v19, %s4109_s26 }
 0x35f   : > { %1142 = vrot.lane.b32.xlu1 %v4458_v21, %s4109_s26 }
 0x360   : > { %1138 = vrot.lane.b32.xlu0 %v4430_v11, %s4109_s26 }
 0x363   : > { %1287 = vrot.lane.b32.xlu1 %v4534_v55, %s4104_s28  ;;  %s4112_s28 = smov 24  }
 0x364   : > { %1144 = vrot.lane.b32.xlu0 %v4456_v20, %s4109_s26 }
 0x3d3   : > { %v1746_v13 = vpop.xlane.xlu0 %1745  ;;  %v1743_v14 = vpop.xlane.xlu1 %1742 }
 0x3d4   : > { %v1754_v15 = vsub.f32 %v1738_v60, %v1746_v13  ;;  %v1753_v16 = vsub.f32 %v1737_v59, %v1743_v14 }
 0x3d6   : > { %v1759_v17 = vmul.f32 1.442695, %v1754_v15  ;;  %v1757_v18 = vmul.f32 1.442695, %v1753_v16 }
 0x3d7   : > { %v1752_v23 = vpop.xlane.xlu1 %1751  ;;  %v1749_v24 = vpop.xlane.xlu0 %1748 }
 0x3d8   : > { %3875 = vpow2.f32 %v1759_v17  ;;  %v1756_v25 = vsub.f32 %v1740_v5, %v1752_v23  ;;  %v1755_v19 = vsub.f32 %v1739_v6, %v1749_v24 }
 0x3d9   : > { %3877 = vpow2.f32 %v1757_v18 }
 0x3da   : > { %v1763_v21 = vmul.f32 1.442695, %v1756_v25  ;;  %v1761_v26 = vmul.f32 1.442695, %v1755_v19 }
 0x3db   : > { %v1141_v11 = vpop.permute.xlu1 %1140  ;;  %v1139_v27 = vpop.permute.xlu0 %1138 }
 0x3dc   : > { %3879 = vpow2.f32 %v1763_v21 }
 0x3dd   : > { %3881 = vpow2.f32 %v1761_v26 }
 0x3df   : > { %v1143_v28 = vpop.permute.xlu1 %1142  ;;  %v1145_v20 = vpop.permute.xlu0 %1144 }
 0x3e0   : > { %v1150_v29 = vcombine.low %v1139_v27, %v1143_v28  ;;  %v1151_v30 = vcombine.high %v1139_v27, %v1143_v28  ;;  %v1166_v31 = vcombine.low %v1141_v11, %v1145_v20  ;;  %v1167_v33 = vcombine.high %v1141_v11, %v1145_v20 }
 0x3e2   : > { %v4546_v34 = vpop.eup %3875  ;;  %v1158_v35 = vrot.slane %v1150_v29, %v4474_v32  ;;  %v1165_v36 = vrot.slane %v1151_v30, %v4474_v32  ;;  %v1174_v37 = vrot.slane %v1166_v31, %v4474_v32  ;;  %v1181_v38 = vrot.slane %v1167_v33, %v4474_v32 }
 0x3e3   : > { %v4552_v39 = vpop.eup %3877  ;;  %v1768_v41 = vsel %vm1432_vm2, %v4546_v34, 0.0  ;;  %v1288_v16 = vpop.permute.xlu1 %1287 }
 0x3e4   : > { %v1182_v42 = vcombine.low %v1158_v35, %v1174_v37  ;;  %v1183_v43 = vcombine.high %v1158_v35, %v1174_v37  ;;  %v1198_v44 = vcombine.low %v1165_v36, %v1181_v38  ;;  %v1199_v45 = vcombine.high %v1165_v36, %v1181_v38  ;;  %1769 = vadd.xlane.f32.xlu1 %v1768_v41 }
 0x3e5   : > { %v1765_v46 = vsel %vm1432_vm2, %v4552_v39, 0.0 }
 0x3e6   : > { %v4558_v47 = vpop.eup %3879  ;;  %v1190_v48 = vrot.slane %v1182_v42, %v4484_v40  ;;  %v1197_v49 = vrot.slane %v1183_v43, %v4484_v40  ;;  %v1206_v50 = vrot.slane %v1198_v44, %v4484_v40  ;;  %v1213_v51 = vrot.slane %v1199_v45, %v4484_v40  ;;  %1766 = vadd.xlane.f32.xlu0 %v1765_v46 }
 0x3e7   : > { %v4564_v52 = vpop.eup %3881  ;;  %v1774_v53 = vsel %vm1432_vm2, %v4558_v47, 0.0 }
 0x3e8   : > { %v1218_v54 = vcombine.low %v1190_v48, %v1197_v49  ;;  %v3454_v56 = vcombine.high %v1190_v48, %v1197_v49  ;;  %v1234_v57 = vcombine.low %v1206_v50, %v1213_v51  ;;  %v3455_v58 = vcombine.high %v1206_v50, %v1213_v51  ;;  %1775 = vadd.xlane.f32.xlu1 %v1774_v53 }
 0x3e9   : > { %v1771_v59 = vsel %vm1432_vm2, %v4564_v52, 0.0 }
 0x3ea   : > { %v1225_v60 = vrot.slane %v1218_v54, %v4474_v32  ;;  %v1233_v61 = vrot.slane %v3454_v56, %v4474_v32  ;;  %v1241_v62 = vrot.slane %v1234_v57, %v4474_v32  ;;  %v1249_v63 = vrot.slane %v3455_v58, %v4474_v32  ;;  %1772 = vadd.xlane.f32.xlu0 %v1771_v59 }
 0x3ec   : > { %v1250_v2 = vcombine.low %v1225_v60, %v1233_v61  ;;  %v1266_v3 = vcombine.low %v1241_v62, %v1249_v63  ;;  %v1251_v4 = vcombine.high %v1225_v60, %v1233_v61  ;;  %v1267_v5 = vcombine.high %v1241_v62, %v1249_v63 }
 0x3ee   : > { %v1258_v6 = vrot.slane %v1250_v2, %v4484_v40  ;;  %v1274_v7 = vrot.slane %v1266_v3, %v4484_v40  ;;  %v1265_v9 = vrot.slane %v1251_v4, %v4484_v40  ;;  %v1281_v10 = vrot.slane %v1267_v5, %v4484_v40 }
 0x3f0   : > { %v1282_v12 = vcombine.low %v1258_v6, %v1274_v7  ;;  %v1283_v13 = vcombine.high %v1258_v6, %v1274_v7  ;;  %v1284_v14 = vcombine.low %v1265_v9, %v1281_v10  ;;  %v1285_v15 = vcombine.high %v1265_v9, %v1281_v10 }
 0x3f2   : > { %3612 = vmatpush3.msra.mxu0 %v1282_v12  ;;  %3617 = vmatpush3.msra.mxu1 %v1283_v13  ;;  %v2677_v13 = vld [vmem:[%s4912_s5] sm:$0xff] }
 0x3f3   : > { %3621 = vmatprep.subr.mxu0 %v4102_v1  ;;  %3626 = vmatprep.subr.mxu1 %v4102_v1 }
 0x3f9   : > { %1293 = vrot.lane.b32.xlu1 %v4534_v55, %s4103_s24  ;;  %s4980_s24 = sld [smem:[#allocation29_spill]] }
 0x400   : > { %1290 = vrot.lane.b32.xlu0 %v4534_v55, %s4106_s2  ;;  %s4985_s2 = sld [smem:[#allocation21_spill]] }
 0x406   : > { %p4987_p13 = scmp.ne.s32.totalorder %s4985_s2, 0 }
 0x408   : > { %p3989_p3 = pnand %p3988_p10, %p4987_p13 }
 0x40a   : > { %p3990_p7 = pneg %p3989_p3 }
 0x471   : > { %v1770_v17 = vpop.xlane.xlu1 %1769 }
 0x472   : > { %3883 = vrcp.f32 %v1770_v17 }
 0x473   : > { %v1767_v18 = vpop.xlane.xlu0 %1766 }
 0x474   : > { %3885 = vrcp.f32 %v1767_v18 }
 0x475   : > { %v1776_v23 = vpop.xlane.xlu1 %1775 }
 0x476   : > { %3887 = vrcp.f32 %v1776_v23 }
 0x477   : > { %v1773_v24 = vpop.xlane.xlu0 %1772 }
 0x478   : > { %3889 = vrcp.f32 %v1773_v24 }
 0x479   : > { %v1294_v25 = vpop.permute.xlu1 %1293 }
 0x47a   : > { %v1312_v19 = vcombine.low %v1288_v16, %v1294_v25  ;;  %v1313_v21 = vcombine.high %v1288_v16, %v1294_v25 }
 0x47b   : > { %v1291_v26 = vpop.permute.xlu0 %1290 }
 0x47c   : > { %v3884_v11 = vpop.eup %3883  ;;  %v1320_v27 = vrot.slane %v1312_v19, %v4474_v32  ;;  %v1327_v28 = vrot.slane %v1313_v21, %v4474_v32  ;;  %v1296_v20 = vcombine.low %v4534_v55, %v1291_v26  ;;  %v1297_v29 = vcombine.high %v4534_v55, %v1291_v26 }
 0x47d   : > { %v1782_v30 = vmul.f32 %v3884_v11, %v4546_v34 }
 0x47e   : > { %v3886_v31 = vpop.eup %3885  ;;  %v1304_v33 = vrot.slane %v1296_v20, %v4474_v32  ;;  %v1311_v35 = vrot.slane %v1297_v29, %v4474_v32 }
 0x47f   : > { %v1781_v36 = vmul.f32 %v3886_v31, %v4552_v39  ;;  %3619 = vmatmul.mubr.msk.f32.vlgmr.msra.gmra.mrb[6].mxu1 %vm1432_vm2, %v1782_v30  ;;  %v2078_v6 = vmul.f32 %v1782_v30, %v1782_v30 }
 0x480   : > { %v3888_v37 = vpop.eup %3887  ;;  %v1328_v38 = vcombine.low %v1304_v33, %v1320_v27  ;;  %v1329_v41 = vcombine.high %v1304_v33, %v1320_v27  ;;  %v1344_v42 = vcombine.low %v1311_v35, %v1327_v28  ;;  %v1345_v43 = vcombine.high %v1311_v35, %v1327_v28  ;;  %3627 = vmatpush3.msra.mxu1 %v1285_v15 }
 0x481   : > { %v1784_v44 = vmul.f32 %v3888_v37, %v4558_v47  ;;  %3614 = vmatmul.mubr.msk.f32.vlgmr.msra.gmra.mrb[6].mxu0 %vm1432_vm2, %v1781_v36  ;;  %3628 = vmatprep.mubr.msk.f32.mxu1 %vm4101_vm0, %v4102_v1  ;;  %v2077_v5 = vmul.f32 %v1781_v36, %v1781_v36 }
 0x482   : > { %v3890_v55 = vpop.eup %3889  ;;  %v1336_v34 = vrot.slane %v1328_v38, %v4484_v40  ;;  %v1343_v39 = vrot.slane %v1329_v41, %v4484_v40  ;;  %v1352_v45 = vrot.slane %v1344_v42, %v4484_v40  ;;  %v1359_v46 = vrot.slane %v1345_v43, %v4484_v40  ;;  %3622 = vmatpush3.msra.mxu0 %v1284_v14  ;;  %v2678_v14 = vld [vmem:[%s4912_s5 + $0x8] sm:$0xff]  ;;  %v2679_v38 = vld [vmem:[%s4912_s5 + $0x10] sm:$0xff]  ;;  %v2680_v41 = vld [vmem:[%s4912_s5 + $0x18] sm:$0xff] }
 0x483   : > { %v1783_v48 = vmul.f32 %v3890_v55, %v4564_v52  ;;  %3623 = vmatprep.mubr.msk.f32.mxu0 %vm4101_vm0, %v4102_v1  ;;  %3629 = vmatmul.mubr.msk.f32.vlgmr.msra.gmra.mrb[8].mxu1 %vm1432_vm2, %v1784_v44  ;;  %v2080_v12 = vmul.f32 %v1784_v44, %v1784_v44  ;;  %v3746_v15 = vpack.c.bf16 %v2678_v14, %v2677_v13 }
 0x484   : > { %v1364_v47 = vcombine.low %v1336_v34, %v1343_v39  ;;  %v3456_v49 = vcombine.high %v1336_v34, %v1343_v39  ;;  %v1380_v50 = vcombine.low %v1352_v45, %v1359_v46  ;;  %v3457_v51 = vcombine.high %v1352_v45, %v1359_v46  ;;  %3631 = vmatprep.subr.mxu0 %v4102_v1 }
 0x485   : > { %3624 = vmatmul.mubr.msk.f32.vlgmr.msra.gmra.mrb[8].mxu0 %vm1432_vm2, %v1783_v48  ;;  %3636 = vmatprep.subr.mxu1 %v4102_v1  ;;  %v2079_v10 = vmul.f32 %v1783_v48, %v1783_v48  ;;  %v3749_v34 = vpack.c.bf16 %v2680_v41, %v2679_v38 }
 0x486   : > { %v1371_v53 = vrot.slane %v1364_v47, %v4474_v32  ;;  %v1379_v54 = vrot.slane %v3456_v49, %v4474_v32  ;;  %v1387_v52 = vrot.slane %v1380_v50, %v4474_v32  ;;  %v1395_v56 = vrot.slane %v3457_v51, %v4474_v32  ;;  %3633 = vmatprep.mubr.msk.f32.mxu0 %vm4101_vm0, %v4102_v1 }
 0x487   : > { %3638 = vmatprep.mubr.msk.f32.mxu1 %vm4101_vm0, %v4102_v1 }
 0x488   : > { %v1396_v57 = vcombine.low %v1371_v53, %v1379_v54  ;;  %v1412_v58 = vcombine.low %v1387_v52, %v1395_v56  ;;  %v1397_v59 = vcombine.high %v1371_v53, %v1379_v54  ;;  %v1413_v60 = vcombine.high %v1387_v52, %v1395_v56 }
 0x48a   : > { %v1404_v61 = vrot.slane %v1396_v57, %v4484_v40  ;;  %v1420_v62 = vrot.slane %v1412_v58, %v4484_v40  ;;  %v1411_v63 = vrot.slane %v1397_v59, %v4484_v40  ;;  %v1427_v2 = vrot.slane %v1413_v60, %v4484_v40  ;;  %v2761_v57 = vld [vmem:[%s4914_s7] sm:$0xff]  ;;  %v2762_v58 = vld [vmem:[%s4914_s7 + $0x8] sm:$0xff] }
 0x48c   : > { %v1428_v3 = vcombine.low %v1404_v61, %v1420_v62  ;;  %v1429_v4 = vcombine.high %v1404_v61, %v1420_v62  ;;  %v1430_v7 = vcombine.low %v1411_v63, %v1427_v2  ;;  %v1431_v9 = vcombine.high %v1411_v63, %v1427_v2 }
 0x48e   : > { %3632 = vmatpush3.msra.mxu0 %v1428_v3  ;;  %3637 = vmatpush3.msra.mxu1 %v1429_v4  ;;  %v3752_v3 = vpack.c.bf16 %v2762_v58, %v2761_v57 }
 0x48f   : > { %3634 = vmatmul.mubr.msk.f32.vlgmr.msra.gmra.mrb[10].mxu0 %vm1432_vm2, %v2077_v5  ;;  %3639 = vmatmul.mubr.msk.f32.vlgmr.msra.gmra.mrb[10].mxu1 %vm1432_vm2, %v2078_v6 }
 0x490   : > { %3641 = vmatprep.subr.mxu0 %v4102_v1  ;;  %3646 = vmatprep.subr.mxu1 %v4102_v1 }
 0x491   : > { %3642 = vmatpush3.msra.mxu0 %v1430_v7  ;;  %3647 = vmatpush3.msra.mxu1 %v1431_v9 }
 0x492   : > { %3643 = vmatprep.mubr.msk.f32.mxu0 %vm4101_vm0, %v4102_v1  ;;  %3648 = vmatprep.mubr.msk.f32.mxu1 %vm4101_vm0, %v4102_v1 }
 0x493   : > { %3644 = vmatmul.mubr.msk.f32.vlgmr.msra.gmra.mrb[12].mxu0 %vm1432_vm2, %v2079_v10  ;;  %3649 = vmatmul.mubr.msk.f32.vlgmr.msra.gmra.mrb[12].mxu1 %vm1432_vm2, %v2080_v12 }
 0x494   : > { %3745 = vmatprep.subr.bf16.mxu0 %v4100_v0  ;;  %3659 = vmatprep.mubr.msk.f32.mxu0 %vm4101_vm0, %v4102_v1 }
 0x495   : > { %3751 = vmatprep.subr.bf16.mxu1 %v4100_v0  ;;  %3670 = vmatprep.mubr.msk.f32.mxu1 %vm4101_vm0, %v4102_v1 }
 0x496   : > { %3747 = vmatpush3.bf16.msra.mxu0 %v3746_v15  ;;  %3753 = vmatpush3.bf16.msra.mxu1 %v3752_v3 }
 0x497   : > { %3748 = vmatprep.subr.bf16.mxu0 %v4100_v0  ;;  %3754 = vmatprep.subr.bf16.mxu1 %v4100_v0 }
 0x49a   : > { %3750 = vmatpush3.bf16.msra.mxu0 %v3749_v34 }
 0x49b   : > { %3757 = vmatprep.subr.bf16.mxu0 %v4100_v0 }
 0x552   : > { %v1927_v16 = vpop.f32.mrb[6].mxu1 }
 0x553   : > { %v3620_v17 = vpop.f32.mrb[7].mxu1 }
 0x554   : > { %v1854_v18 = vpop.f32.mrb[6].mxu0 }
 0x555   : > { %v3615_v23 = vpop.f32.mrb[7].mxu0 }
 0x556   : > { %v2073_v24 = vpop.f32.mrb[8].mxu1 }
 0x557   : > { %v2389_v25 = vcombine.low %v1927_v16, %v2073_v24  ;;  %v2390_v19 = vcombine.high %v1927_v16, %v2073_v24  ;;  %v3630_v21 = vpop.f32.mrb[9].mxu1 }
 0x558   : > { %v2000_v26 = vpop.f32.mrb[8].mxu0 }
 0x559   : > { %v2373_v11 = vcombine.low %v1854_v18, %v2000_v26  ;;  %v2374_v27 = vcombine.high %v1854_v18, %v2000_v26  ;;  %v2397_v28 = vrot.slane %v2389_v25, %v4474_v32  ;;  %v2404_v20 = vrot.slane %v2390_v19, %v4474_v32  ;;  %v3625_v29 = vpop.f32.mrb[9].mxu0 }
 0x55a   : > { %v2764_v29 = vld [vmem:[%s4914_s7 + $0x18] sm:$0xff] }
 0x55b   : > { %v2381_v30 = vrot.slane %v2373_v11, %v4474_v32  ;;  %v2388_v31 = vrot.slane %v2374_v27, %v4474_v32 }
 0x55d   : > { %v2405_v33 = vcombine.low %v2381_v30, %v2397_v28  ;;  %v2406_v35 = vcombine.high %v2381_v30, %v2397_v28  ;;  %v2421_v36 = vcombine.low %v2388_v31, %v2404_v20  ;;  %v2422_v37 = vcombine.high %v2388_v31, %v2404_v20  ;;  %v2763_v20 = vld [vmem:[%s4914_s7 + $0x10] sm:$0xff] }
 0x55f   : > { %v2413_v42 = vrot.slane %v2405_v33, %v4484_v40  ;;  %v2420_v43 = vrot.slane %v2406_v35, %v4484_v40  ;;  %v2429_v44 = vrot.slane %v2421_v36, %v4484_v40  ;;  %v2436_v55 = vrot.slane %v2422_v37, %v4484_v40 }
 0x560   : > { %v3755_v36 = vpack.c.bf16 %v2764_v29, %v2763_v20  ;;  %v2889_v20 = vld [vmem:[%s4915_s8 + $0x10] sm:$0xff]  ;;  %v2890_v29 = vld [vmem:[%s4915_s8 + $0x18] sm:$0xff] }
 0x561   : > { %v2441_v39 = vcombine.low %v2413_v42, %v2420_v43  ;;  %v3474_v45 = vcombine.high %v2413_v42, %v2420_v43  ;;  %v2457_v46 = vcombine.low %v2429_v44, %v2436_v55  ;;  %v3475_v48 = vcombine.high %v2429_v44, %v2436_v55 }
 0x562   : > { %v2150_v47 = vpop.f32.mrb[10].mxu0  ;;  %v2223_v49 = vpop.f32.mrb[10].mxu1  ;;  %3756 = vmatpush3.bf16.msra.mxu1 %v3755_v36  ;;  %v2973_v36 = vld [vmem:[#allocation7 + $0x10] sm:$0xff] }
 0x563   : > { %v3635_v50 = vpop.f32.mrb[11].mxu0  ;;  %v3640_v51 = vpop.f32.mrb[11].mxu1  ;;  %v2448_v53 = vrot.slane %v2441_v39, %v4474_v32  ;;  %v2456_v54 = vrot.slane %v3474_v45, %v4474_v32  ;;  %v2464_v52 = vrot.slane %v2457_v46, %v4474_v32  ;;  %v2472_v56 = vrot.slane %v3475_v48, %v4474_v32  ;;  %3763 = vmatprep.subr.bf16.mxu1 %v4100_v0 }
 0x565   : > { %v2474_v59 = vcombine.high %v2448_v53, %v2456_v54  ;;  %v2490_v60 = vcombine.high %v2464_v52, %v2472_v56  ;;  %v2473_v61 = vcombine.low %v2448_v53, %v2456_v54  ;;  %v2489_v62 = vcombine.low %v2464_v52, %v2472_v56 }
 0x566   : > { %v2296_v63 = vpop.f32.mrb[12].mxu0  ;;  %v2369_v2 = vpop.f32.mrb[12].mxu1 }
 0x567   : > { %v2526_v4 = vcombine.low %v2150_v47, %v2296_v63  ;;  %v2527_v5 = vcombine.high %v2150_v47, %v2296_v63  ;;  %v2542_v6 = vcombine.low %v2223_v49, %v2369_v2  ;;  %v2543_v7 = vcombine.high %v2223_v49, %v2369_v2  ;;  %v3645_v9 = vpop.f32.mrb[13].mxu0  ;;  %v3650_v10 = vpop.f32.mrb[13].mxu1 }
 0x568   : > { %v2488_v12 = vrot.slane %v2474_v59, %v4484_v40  ;;  %v2504_v13 = vrot.slane %v2490_v60, %v4484_v40  ;;  %v2481_v14 = vrot.slane %v2473_v61, %v4484_v40  ;;  %v2497_v15 = vrot.slane %v2489_v62, %v4484_v40 }
 0x569   : > { %v2534_v16 = vrot.slane %v2526_v4, %v4474_v32  ;;  %v2541_v17 = vrot.slane %v2527_v5, %v4474_v32  ;;  %v2550_v18 = vrot.slane %v2542_v6, %v4474_v32  ;;  %v2557_v23 = vrot.slane %v2543_v7, %v4474_v32  ;;  %v3478_v5 = vld [vmem:[%s4913_s6] ss:$0 sm:$0xff] }
 0x56a   : > { %v2507_v24 = vcombine.low %v2488_v12, %v2504_v13  ;;  %v2506_v25 = vcombine.high %v2481_v14, %v2497_v15  ;;  %v2508_v19 = vcombine.high %v2488_v12, %v2504_v13  ;;  %v2505_v21 = vcombine.low %v2481_v14, %v2497_v15 }
 0x56b   : > { %v2558_v26 = vcombine.low %v2534_v16, %v2550_v18  ;;  %v2559_v11 = vcombine.high %v2534_v16, %v2550_v18  ;;  %v2574_v27 = vcombine.low %v2541_v17, %v2557_v23  ;;  %v2575_v28 = vcombine.high %v2541_v17, %v2557_v23 }
 0x56c   : > { %2514 = vrot.lane.b32.xlu1 %v2507_v24, %s4110_s16  ;;  %2510 = vrot.lane.b32.xlu0 %v2506_v25, %s4111_s3 }
 0x56d   : > { %v2566_v30 = vrot.slane %v2558_v26, %v4484_v40  ;;  %v2573_v31 = vrot.slane %v2559_v11, %v4484_v40  ;;  %v2582_v33 = vrot.slane %v2574_v27, %v4484_v40  ;;  %v2589_v35 = vrot.slane %v2575_v28, %v4484_v40  ;;  %v2888_v27 = vld [vmem:[%s4915_s8 + $0x8] sm:$0xff] }
 0x56f   : > { %v2594_v37 = vcombine.low %v2566_v30, %v2573_v31  ;;  %v3476_v38 = vcombine.high %v2566_v30, %v2573_v31  ;;  %v2610_v41 = vcombine.low %v2582_v33, %v2589_v35  ;;  %v3477_v42 = vcombine.high %v2582_v33, %v2589_v35  ;;  %v2971_v31 = vld [vmem:[#allocation7] sm:$0xff]  ;;  %v2972_v33 = vld [vmem:[#allocation7 + $0x8] sm:$0xff] }
 0x570   : > { %2518 = vrot.lane.b32.xlu0 %v2508_v19, %s4112_s28  ;;  %v3761_v30 = vpack.c.bf16 %v2890_v29, %v2889_v20  ;;  %v3764_v35 = vpack.c.bf16 %v2972_v33, %v2971_v31 }
 0x571   : > { %v2601_v43 = vrot.slane %v2594_v37, %v4474_v32  ;;  %v2609_v44 = vrot.slane %v3476_v38, %v4474_v32  ;;  %v2617_v55 = vrot.slane %v2610_v41, %v4474_v32  ;;  %v2625_v34 = vrot.slane %v3477_v42, %v4474_v32  ;;  %v2974_v37 = vld [vmem:[#allocation7 + $0x18] sm:$0xff] }
 0x572   : > { %v3767_v38 = vpack.c.bf16 %v2974_v37, %v2973_v36 }
 0x573   : > { %v2627_v39 = vcombine.high %v2601_v43, %v2609_v44  ;;  %v2643_v45 = vcombine.high %v2617_v55, %v2625_v34  ;;  %v2626_v46 = vcombine.low %v2601_v43, %v2609_v44  ;;  %v2642_v48 = vcombine.low %v2617_v55, %v2625_v34 }
 0x575   : > { %v2641_v47 = vrot.slane %v2627_v39, %v4484_v40  ;;  %v2657_v49 = vrot.slane %v2643_v45, %v4484_v40  ;;  %v2634_v50 = vrot.slane %v2626_v46, %v4484_v40  ;;  %v2650_v51 = vrot.slane %v2642_v48, %v4484_v40  ;;  %v3481_v45 = vld [vmem:[%s4921_s14] ss:$0 sm:$0xff] }
 0x576   : > { %v3051_v48 = vld [vmem:[%s4918_s11] sm:$0xff] }
 0x577   : > { %v2660_v53 = vcombine.low %v2641_v47, %v2657_v49  ;;  %v2659_v54 = vcombine.high %v2634_v50, %v2650_v51  ;;  %v2661_v52 = vcombine.high %v2641_v47, %v2657_v49  ;;  %v2658_v56 = vcombine.low %v2634_v50, %v2650_v51  ;;  %v3052_v47 = vld [vmem:[%s4918_s11 + $0x8] sm:$0xff]  ;;  %v3482_v49 = vld [vmem:[%s4922_s15] ss:$0 sm:$0xff] }
 0x578   : > { %v3770_v51 = vpack.c.bf16 %v3052_v47, %v3051_v48 }
 0x579   : > { %2667 = vrot.lane.b32.xlu0 %v2660_v53, %s4110_s16  ;;  %2663 = vrot.lane.b32.xlu1 %v2659_v54, %s4111_s3  ;;  %v3053_v54 = vld [vmem:[%s4918_s11 + $0x10] sm:$0xff]  ;;  %s4982_s16 = sld [smem:[#allocation28_spill]]  ;;  %s4944_s3 = scalar_lea.vmem [#allocation9], %s4383_s23 }
 0x57a   : > { %s4830_s26 = sshll.u32 %s4944_s3, 4  ;;  %s4862_s26 = int_to_ptr.vmem [resolvable:$true] %s4830_s26 }
 0x57d   : > { %2671 = vrot.lane.b32.xlu1 %v2661_v52, %s4112_s28  ;;  %v3054_v52 = vld [vmem:[%s4918_s11 + $0x18] sm:$0xff]  ;;  %s4113_s28 = smov [#allocation8]  }
 0x5de   : > { %v2511_v32 = vpop.permute.xlu0 %2510  ;;  %v2515_v57 = vpop.permute.xlu1 %2514 }
 0x5df   : > { %v2521_v58 = vsel %vm1432_vm2, %v2505_v21, %v2511_v32  ;;  %v3055_v32 = vld [vmem:[%s4918_s11 + $0x20] sm:$0xff] }
 0x5e0   : > { %v2523_v60 = vsel %vm2522_vm3, %v2521_v58, %v2515_v57  ;;  %v3056_v57 = vld [vmem:[%s4918_s11 + $0x28] sm:$0xff] }
 0x5e2   : > { %v2519_v59 = vpop.permute.xlu0 %2518 }
 0x5e3   : > { %v2525_v61 = vsel %vm2524_vm4, %v2523_v60, %v2519_v59  ;;  %v3776_v60 = vpack.c.bf16 %v3056_v57, %v3055_v32 }
 0x5e4   : > { %3660 = vmatmul.mubr.msk.f32.vlgmr.msra.gmra.mrb[14].mxu0 %vm693_vm1, %v2525_v61  ;;  %v3140_v61 = vld [vmem:[%s4980_s24] sm:$0xff] }
 0x5e5   : > { %3681 = vmatprep.mubr.msk.f32.mxu0 %vm4101_vm0, %v4102_v1 }
 0x5eb   : > { %v2664_v40 = vpop.permute.xlu1 %2663  ;;  %v2668_v62 = vpop.permute.xlu0 %2667 }
 0x5ec   : > { %v2674_v63 = vsel %vm1432_vm2, %v2658_v56, %v2664_v40  ;;  %v3773_v56 = vpack.c.bf16 %v3054_v52, %v3053_v54  ;;  %v3141_v40 = vld [vmem:[%s4980_s24 + $0x8] sm:$0xff] }
 0x5ed   : > { %v2675_v3 = vsel %vm2522_vm3, %v2674_v63, %v2668_v62  ;;  %v3782_v63 = vpack.c.bf16 %v3141_v40, %v3140_v61 }
 0x5ef   : > { %v2672_v2 = vpop.permute.xlu1 %2671 }
 0x5f0   : > { %v2676_v4 = vsel %vm2524_vm4, %v2675_v3, %v2672_v2  ;;  %v3057_v3 = vld [vmem:[%s4918_s11 + $0x30] sm:$0xff] }
 0x5f1   : > { %3671 = vmatmul.mubr.msk.f32.vlgmr.msra.gmra.mrb[14].mxu1 %vm693_vm1, %v2676_v4  ;;  %v3058_v4 = vld [vmem:[%s4918_s11 + $0x38] sm:$0xff] }
 0x5f2   : > { %3692 = vmatprep.mubr.msk.f32.mxu1 %vm4101_vm0, %v4102_v1  ;;  %3765 = vmatpush3.bf16.msra.mxu1 %v3764_v35 }
 0x5f3   : > { %3766 = vmatprep.subr.bf16.mxu1 %v4100_v0 }
 0x5f6   : > { %3768 = vmatpush3.bf16.msra.mxu1 %v3767_v38 }
 0x5f7   : > { %3781 = vmatprep.subr.bf16.mxu1 %v4100_v0 }
 0x6b7   : > { %v2757_v6 = vpop.f32.mrb[14].mxu0 }
 0x6b8   : > { %v2758_v7 = vadd.f32 %v3478_v5, %v2757_v6  ;;  %v3661_v9 = vpop.f32.mrb[15].mxu0  ;;  %v3779_v5 = vpack.c.bf16 %v3058_v4, %v3057_v3  ;;  %v3142_v6 = vld [vmem:[%s4980_s24 + $0x10] sm:$0xff] }
 0x6b9   : > { %v3144_v9 = vld [vmem:[%s4980_s24 + $0x20] sm:$0xff] }
 0x6ba   : > { %v2842_v10 = vadd.f32 %v2758_v7, %v4420_v8  ;;  %v3143_v7 = vld [vmem:[%s4980_s24 + $0x18] sm:$0xff] }
 0x6bc   : > { %v2844_v12 = vsel %vm693_vm1, %v2842_v10, 0.0 }
 0x6bd   : > { %2845 = vadd.xlane.f32.xlu0 %v2844_v12 }
 0x6c4   : > { %v2834_v13 = vpop.f32.mrb[14].mxu1 }
 0x6c5   : > { %v2843_v14 = vadd.f32 %v2834_v13, %v4462_v22  ;;  %v3672_v15 = vpop.f32.mrb[15].mxu1  ;;  %v2887_v22 = vld [vmem:[%s4915_s8] sm:$0xff]  ;;  %v3146_v13 = vld [vmem:[%s4980_s24 + $0x30] sm:$0xff] }
 0x6c6   : > { %v3758_v28 = vpack.c.bf16 %v2888_v27, %v2887_v22 }
 0x6c7   : > { %v2872_v16 = vsel %vm693_vm1, %v2843_v14, 0.0 }
 0x6c8   : > { %2873 = vadd.xlane.f32.xlu1 %v2872_v16  ;;  %3759 = vmatpush3.bf16.msra.mxu0 %v3758_v28  ;;  %v3483_v16 = vld [vmem:[%s4981_s25] ss:$0 sm:$0xff] }
 0x6c9   : > { %3760 = vmatprep.subr.bf16.mxu0 %v4100_v0 }
 0x6cc   : > { %3762 = vmatpush3.bf16.msra.mxu0 %v3761_v30 }
 0x6cd   : > { %3769 = vmatprep.subr.bf16.mxu0 %v4100_v0 }
 0x74a   : > { %v2846_v17 = vpop.xlane.xlu0 %2845 }
 0x74b   : > { %v2848_v18 = vmul.f32 0.03125, %v2846_v17 }
 0x74d   : > { %v2849_v23 = vsub.f32 %v2842_v10, %v2848_v18  ;;  %v3145_v10 = vld [vmem:[%s4980_s24 + $0x28] sm:$0xff] }
 0x74e   : > { %v3788_v12 = vpack.c.bf16 %v3145_v10, %v3144_v9 }
 0x74f   : > { %v2850_v24 = vmul.f32 %v2849_v23, %v2849_v23 }
 0x751   : > { %v2851_v25 = vsel %vm693_vm1, %v2850_v24, 0.0 }
 0x752   : > { %2852 = vadd.xlane.f32.xlu0 %v2851_v25 }
 0x755   : > { %v2874_v19 = vpop.xlane.xlu1 %2873 }
 0x756   : > { %v2875_v21 = vmul.f32 0.03125, %v2874_v19 }
 0x758   : > { %v2876_v8 = vsub.f32 %v2843_v14, %v2875_v21  ;;  %v3147_v14 = vld [vmem:[%s4980_s24 + $0x38] sm:$0xff] }
 0x759   : > { %v3791_v15 = vpack.c.bf16 %v3147_v14, %v3146_v13 }
 0x75a   : > { %v2877_v26 = vmul.f32 %v2876_v8, %v2876_v8 }
 0x75c   : > { %v2878_v11 = vsel %vm693_vm1, %v2877_v26, 0.0 }
 0x75d   : > { %2879 = vadd.xlane.f32.xlu0 %v2878_v11 }
 0x7df   : > { %v2853_v41 = vpop.xlane.xlu0 %2852 }
 0x7e0   : > { %v2854_v42 = vmul.f32 0.03125, %v2853_v41 }
 0x7e2   : > { %v2855_v43 = vadd.f32 1e-05, %v2854_v42 }
 0x7e4   : > { %3891 = vrsqrt.f32 %v2855_v43 }
 0x7ea   : > { %v2880_v44 = vpop.xlane.xlu0 %2879 }
 0x7eb   : > { %v2881_v55 = vmul.f32 0.03125, %v2880_v44 }
 0x7ed   : > { %v2882_v34 = vadd.f32 1e-05, %v2881_v55 }
 0x7ee   : > { %v3892_v39 = vpop.eup %3891 }
 0x7ef   : > { %v2857_v46 = vmul.f32 %v3892_v39, %v2849_v23  ;;  %3893 = vrsqrt.f32 %v2882_v34 }
 0x7f1   : > { %v2864_v50 = vmul.f32 %v3481_v45, %v2857_v46 }
 0x7f3   : > { %v2871_v53 = vadd.f32 %v3482_v49, %v2864_v50 }
 0x7f5   : > { %3682 = vmatmul.mubr.msk.f32.vlgmr.msra.gmra.mrb[16].mxu0 %vm693_vm1, %v2871_v53 }
 0x7f6   : > { %3771 = vmatpush3.bf16.msra.mxu0 %v3770_v51  ;;  %3711 = vmatprep.mubr.msk.f32.mxu0 %vm4101_vm0, %v4102_v1  ;;  %v3490_v51 = vld [vmem:[%s4984_s19] ss:$0 sm:$0xff]  ;;  %s3991_s19 = sshll.u32 %s4113_s28, 4  ;;  %s3992_s19 = int_to_ptr.vmem [resolvable:$false] %s3991_s19 }
 0x7f7   : > { %3772 = vmatprep.subr.bf16.mxu0 %v4100_v0  ;;  %s3993_s25 = scalar_lea.vmem %s3992_s19, 256  ;;  %p3994_p9 = scmp.lt.s32.totalorder %s4824_s20, %s3992_s19 }
 0x7f8   : > { %p3995_p2 = scmp.lt.s32.totalorder %s3993_s25, %s3987_s0 }
 0x7f9   : > { %v3894_v58 = vpop.eup %3893 }
 0x7fa   : > { %v2884_v59 = vmul.f32 %v3894_v58, %v2876_v8  ;;  %3774 = vmatpush3.bf16.msra.mxu0 %v3773_v56  ;;  %p3996_p5 = por %p3995_p2, %p3994_p9 }
 0x7fb   : > { %3775 = vmatprep.subr.bf16.mxu0 %v4100_v0 }
 0x7fc   : > { %v2885_v62 = vmul.f32 %v3481_v45, %v2884_v59  ;;  %p3997_p1 = pnand %p3996_p5, %p3990_p7 }
 0x7fe   : > { %v2886_v2 = vadd.f32 %v3482_v49, %v2885_v62  ;;  %3777 = vmatpush3.bf16.msra.mxu0 %v3776_v60  ;;  %v3489_v49 = vld [vmem:[%s4983_s29] ss:$0 sm:$0xff]  ;;  %s3268_s29 = scalar_lea.sflag [#allocation4], %s4380_s13 }
 0x7ff   : > { %3778 = vmatprep.subr.bf16.mxu0 %v4100_v0 }
 0x800   : > { %3693 = vmatmul.mubr.msk.f32.vlgmr.msra.gmra.mrb[16].mxu1 %vm693_vm1, %v2886_v2 }
 0x801   : > { %3783 = vmatpush3.bf16.msra.mxu1 %v3782_v63  ;;  %3730 = vmatprep.mubr.msk.f32.mxu1 %vm4101_vm0, %v4102_v1  ;;  %v3785_v1 = vpack.c.bf16 %v3143_v7, %v3142_v6 }
 0x802   : > { %3784 = vmatprep.subr.bf16.mxu1 %v4100_v0  ;;  %3780 = vmatpush3.bf16.msra.mxu0 %v3779_v5 }
 0x805   : > { %3786 = vmatpush3.bf16.msra.mxu1 %v3785_v1 }
 0x806   : > { %3787 = vmatprep.subr.bf16.mxu1 %v4100_v0 }
 0x809   : > { %3789 = vmatpush3.bf16.msra.mxu1 %v3788_v12 }
 0x80a   : > { %3790 = vmatprep.subr.bf16.mxu1 %v4100_v0  ;;  %v3486_v0 = vld [vmem:[%s4982_s16] ss:$0 sm:$0xff]  ;;  %s4822_s16 = scalar_lea.hbm %s4986_s10, %s4945_s27 }
 0x80d   : > { %3792 = vmatpush3.bf16.msra.mxu1 %v3791_v15 }
 0x8c8   : > { %v2967_v17 = vpop.f32.mrb[16].mxu0 }
 0x8c9   : > { %v2968_v18 = vadd.f32 %v3483_v16, %v2967_v17  ;;  %v3683_v23 = vpop.f32.mrb[17].mxu0 }
 0x8cb   : > { %vm3048_vm6 = vcmp.gt.f32.partialorder %v2968_v18, 0.0 }
 0x8cc   : > { %v3049_v24 = vsel %vm3048_vm6, %v2968_v18, 0.0 }
 0x8cd   : > { %3712 = vmatmul.mubr.msk.f32.vlgmr.msra.gmra.mrb[18].mxu0 %vm3066_vm5, %v3049_v24 }
 0x8d3   : > { %v3044_v25 = vpop.f32.mrb[16].mxu1 }
 0x8d4   : > { %v3050_v19 = vsel %vm3048_vm6, %v3044_v25, 0.0  ;;  %v3694_v21 = vpop.f32.mrb[17].mxu1 }
 0x8d5   : > { %3731 = vmatmul.mubr.msk.f32.vlgmr.msra.gmra.mrb[18].mxu1 %vm3066_vm5, %v3050_v19 }
 0x9a0   : > { %v3136_v8 = vpop.f32.mrb[18].mxu0 }
 0x9a1   : > { %v3137_v26 = vadd.f32 %v3486_v0, %v3136_v8  ;;  %v3713_v11 = vpop.f32.mrb[19].mxu0 }
 0x9a3   : > { %v3221_v22 = vadd.f32 %v3137_v26, %v2871_v53 }
 0x9a5   : > { %v3223_v27 = vsel %vm693_vm1, %v3221_v22, 0.0 }
 0x9a6   : > { %3224 = vadd.xlane.f32.xlu1 %v3223_v27 }
 0x9a8   : > { %v3217_v28 = vpop.f32.mrb[18].mxu1 }
 0x9a9   : > { %v3222_v20 = vadd.f32 %v3217_v28, %v2886_v2  ;;  %v3732_v29 = vpop.f32.mrb[19].mxu1 }
 0x9ab   : > { %v3251_v30 = vsel %vm693_vm1, %v3222_v20, 0.0 }
 0x9ac   : > { %3252 = vadd.xlane.f32.xlu0 %v3251_v30 }
 0xa33   : > { %v3225_v31 = vpop.xlane.xlu1 %3224 }
 0xa34   : > { %v3226_v33 = vmul.f32 0.03125, %v3225_v31 }
 0xa36   : > { %v3227_v35 = vsub.f32 %v3221_v22, %v3226_v33 }
 0xa38   : > { %v3228_v36 = vmul.f32 %v3227_v35, %v3227_v35 }
 0xa39   : > { %v3253_v37 = vpop.xlane.xlu0 %3252 }
 0xa3a   : > { %v3254_v38 = vmul.f32 0.03125, %v3253_v37  ;;  %v3229_v41 = vsel %vm693_vm1, %v3228_v36, 0.0 }
 0xa3b   : > { %3230 = vadd.xlane.f32.xlu1 %v3229_v41 }
 0xa3c   : > { %v3255_v42 = vsub.f32 %v3222_v20, %v3254_v38 }
 0xa3e   : > { %v3256_v43 = vmul.f32 %v3255_v42, %v3255_v42 }
 0xa40   : > { %v3257_v44 = vsel %vm693_vm1, %v3256_v43, 0.0 }
 0xa41   : > { %3258 = vadd.xlane.f32.xlu0 %v3257_v44 }
 0xac8   : > { %v3231_v55 = vpop.xlane.xlu1 %3230 }
 0xac9   : > { %v3232_v34 = vmul.f32 0.03125, %v3231_v55 }
 0xacb   : > { %v3233_v39 = vadd.f32 1e-05, %v3232_v34 }
 0xacd   : > { %3895 = vrsqrt.f32 %v3233_v39 }
 0xace   : > { %v3259_v45 = vpop.xlane.xlu0 %3258 }
 0xacf   : > { %v3260_v46 = vmul.f32 0.03125, %v3259_v45 }
 0xad1   : > { %v3261_v48 = vadd.f32 1e-05, %v3260_v46 }
 0xad3   : > { %3897 = vrsqrt.f32 %v3261_v48 }
 0xad7   : > { %v3896_v47 = vpop.eup %3895 }
 0xad8   : > { %v3235_v50 = vmul.f32 %v3896_v47, %v3227_v35 }
 0xada   : > { %v3242_v53 = vmul.f32 %v3489_v49, %v3235_v50 }
 0xadc   : > { %v3249_v54 = vadd.f32 %v3490_v51, %v3242_v53 }
 0xadd   : > { %v3898_v52 = vpop.eup %3897 }
 0xade   : > { %v3263_v56 = vmul.f32 %v3898_v52, %v3255_v42  ;;  %3250 = vst.msk [vmem:[%s672_s22] sm:$0xff] %vm693_vm1, %v3249_v54 }
 0xadf   : > { %4000 = shalt.err (!%p3997_p1)
}
 0xae0   : > { %s4001_s22 = scalar_lea.hbm %s4822_s16, 128  ;;  %s4005_s28 = scalar_lea.hbm %s4986_s10, 256 }
 0xae1   : > { %p4002_p6 = scmp.ne.s32.totalorder %s4822_s16, %s4001_s22  ;;  %p4006_p12 = scmp.lt.u32.totalorder %s4822_s16, %s4986_s10 }
 0xae2   : > { %p4007_p11 = scmp.lt.u32.totalorder %s4005_s28, %s4001_s22  ;;  %p4009_p10 = scmp.lt.u32.totalorder %s4001_s22, %s4822_s16 }
 0xae3   : > { %p4003_p8 = pnand %p4002_p6, %p4987_p13 }
 0xae4   : > { %p4008_p0 = por %p4007_p11, %p4006_p12 }
 0xae5   : > { %p4004_p4 = pneg %p4003_p8 }
 0xae6   : > { %p4010_p3 = por %p4009_p10, %p4008_p0 }
 0xae8   : > { %p4011_p7 = pnand %p4010_p3, %p4004_p4 }
 0xaea   : > { %4014 = shalt.err (!%p4011_p7)
}
 0xaeb   : > { %3801 = dma.vmem_to_hbm [thread:$0]  (%p4987_p13), %s4824_s20, 128, %s4822_s16, %s3268_s29   ;;  %v3264_v32 = vmul.f32 %v3489_v49, %v3263_v56 }
 0xaec   : > { %s4988_s27 = sshll.u32 %s4236_s1, 7  ;;  %s4989_s25 = sld [smem:[#allocation33_spill]] }
 0xaed   : > { %v3265_v57 = vadd.f32 %v3490_v51, %v3264_v32  ;;  %s4990_s9 = scalar_lea.vmem [#allocation9], %s4383_s23  ;;  %s3273_s28 = scalar_lea.sflag [#allocation10], %s4380_s13 }
 0xaee   : > { %s4015_s19 = scalar_lea.vmem %s4862_s26, 128  ;;  %s4114_s1 = smov [#allocation9]  }
 0xaef   : > { %3266 = vst.msk [vmem:[%s4990_s9] sm:$0xff] %vm693_vm1, %v3265_v57  ;;  %p4016_p9 = scmp.ne.s32.totalorder %s4862_s26, %s4015_s19  ;;  %s4019_s20 = sshll.u32 %s4114_s1, 4  ;;  %s4020_s20 = int_to_ptr.vmem [resolvable:$false] %s4019_s20 }
 0xaf0   : > { %s4021_s16 = scalar_lea.vmem %s4020_s20, 256  ;;  %p4022_p1 = scmp.lt.s32.totalorder %s4862_s26, %s4020_s20 }
 0xaf1   : > { %p4017_p2 = pnand %p4016_p9, %p4987_p13  ;;  %p4023_p6 = scmp.lt.s32.totalorder %s4021_s16, %s4015_s19 }
 0xaf2   : > { %s4859_s22 = scalar_lea.hbm %s4989_s25, %s4988_s27 }
 0xaf3   : > { %p4018_p5 = pneg %p4017_p2  ;;  %p4024_p8 = por %p4023_p6, %p4022_p1 }
 0xaf5   : > { %p4025_p4 = pnand %p4024_p8, %p4018_p5 }
 0xaf7   : > { %4028 = shalt.err (!%p4025_p4)
}
 0xaf8   : > { %s4029_s13 = scalar_lea.hbm %s4859_s22, 128  ;;  %s4033_s27 = scalar_lea.hbm %s4989_s25, 256 }
 0xaf9   : > { %p4030_p12 = scmp.ne.s32.totalorder %s4859_s22, %s4029_s13  ;;  %p4034_p10 = scmp.lt.u32.totalorder %s4859_s22, %s4989_s25 }
 0xafa   : > { %p4035_p3 = scmp.lt.u32.totalorder %s4033_s27, %s4029_s13  ;;  %p4037_p9 = scmp.lt.u32.totalorder %s4029_s13, %s4859_s22 }
 0xafb   : > { %p4031_p11 = pnand %p4030_p12, %p4987_p13 }
 0xafc   : > { %p4036_p7 = por %p4035_p3, %p4034_p10 }
 0xafd   : > { %p4032_p0 = pneg %p4031_p11 }
 0xafe   : > { %p4038_p2 = por %p4037_p9, %p4036_p7 }
 0xb00   : > { %p4039_p5 = pnand %p4038_p2, %p4032_p0 }
 0xb02   : > { %4042 = shalt.err (!%p4039_p5)
}
 0xb03   : > { %3802 = dma.vmem_to_hbm [thread:$0]  (%p4987_p13), %s4862_s26, 128, %s4859_s22, %s3273_s28  }
 0xb04 PF: > { %s4991_s9 = sld [smem:[#allocation16_spill]]  ;;  %s4992_s19 = sld [smem:[#allocation18_spill]] }
 0xb05   : > { %p4994_p6 = scmp.ge.s32.totalorder %s4093_s21, 2 }
 0xb0a   : > { %s3311_s1 = sand.u32 1, %s4991_s9   ;;  %p4993_p1 = scmp.ne.s32.totalorder %s4992_s19, 0 }
 0xb0b   : > { %s3312_s20 = scalar_lea.sflag [#allocation4], %s3311_s1 }
 0xb0c   : > { %p3817_p8 = pnand %p4994_p6, %p4993_p1 }
 0xb0e   : > { %4072 = dma.done.wait (!%p3817_p8), %s3312_s20, 128  }
 0xb0f   : > { %4074 = vsyncadd (!%p3817_p8), %s3312_s20, 4294967168  ;;  %s3321_s16 = scalar_lea.sflag [#allocation10], %s3311_s1 }
 0xb10   : > { %4076 = dma.done.wait (!%p3817_p8), %s3321_s16, 128  }
 0xb11   : > { %4078 = vsyncadd (!%p3817_p8), %s3321_s16, 4294967168  ;;  %s4995_s21 = sld [smem:[#allocation19_spill]]  ;;  %s4996_s2 = sld [smem:[#allocation17_spill]] }
 0xb12   : > { %s4997_s20 = sld [smem:[#allocation20_spill]]  ;;  %s4998_s0 = smov %s4085_s30 }
 0xb17   : > { %p39_p13 = scmp.ge.s32.totalorder %s4995_s21, 4   ;;  %s4999_s30 = smov %s4996_s2 }
 0xb19   :  { %41 = sbr.rel (!%p39_p13) target bundleno = 22 (0x16), region = 171 }
 0xb20   :  { %3326 = vsyncpa [#allocation3], 1 }
 0xb21   :  { %3328 = vsyncpa [#allocation3 + $0x1], 1 }
 0xb22   :  { %3329 = vsyncpa [#allocation6], 1 }
 0xb23   :  { %3331 = vsyncpa [#allocation6 + $0x1], 1 }
 0xb24   :  { %3332 = vsyncpa [#allocation4], 1 }
 0xb25   :  { %3334 = vsyncpa [#allocation4 + $0x1], 1 }
 0xb26   :  { %3335 = vsyncpa [#allocation10], 1 }
 0xb27   :  { %3337 = vsyncpa [#allocation10 + $0x1], 1 }

</bundles_post_ra>
